<compile_context>
chip_gen: v7x
topology: tpu7x:2x2x1
jax: 0.10.0
libtpu: 0.0.40
codegen_flags: <defaults>
</compile_context>

<pallas_src>
import functools

import jax
import jax.numpy as jnp
from jax.experimental import pallas as pl


# ----------------------------- fused Pallas kernel -----------------------------

def _mgllama_fused_kernel(a_ref, x_ref, vecs_ref, wpre_ref, wattn_ref, wgu_ref, wd_ref,
                          o_ref, *, num_layers, num_heads, head_dim, eps):
    S, F = x_ref.shape
    H = o_ref.shape[-1]
    L, nh, hd = num_layers, num_heads, head_dim

    a = a_ref[...]                                  # [S, S] normalized adjacency
    x = x_ref[...]                                  # [S, F]

    # --- packed small-vector slab (single DMA): cos | sin | biases | norm rows ---
    cos = vecs_ref[0:S, :]                          # [S, H] (per-head table tiled over heads)
    sin = vecs_ref[S:2 * S, :]
    base = 2 * S
    gcn1_b = vecs_ref[base + 0:base + 1, :]
    gcn2_b = vecs_ref[base + 1:base + 2, :]
    bb     = vecs_ref[base + 2:base + 3, :]         # W_beta1.bias + W_beta2.bias
    comb_b = vecs_ref[base + 3:base + 4, :]
    fin_w  = vecs_ref[base + 4:base + 5, :]
    ln1 = [vecs_ref[base + 5 + l:base + 6 + l, :] for l in range(L)]
    ln2 = [vecs_ref[base + 5 + L + l:base + 6 + L + l, :] for l in range(L)]

    # --- packed pre/post-Llama weight slab (single DMA) ---
    w_gcn1 = wpre_ref[0:F, 0:H]                     # GCN1 W^T                      [F, H]
    w_g2b1 = wpre_ref[F:F + H, :]                   # [GCN2 W^T | W_beta1 W^T]      [H, 2H]
    w_b2   = wpre_ref[F + H:F + 2 * H, 0:H]         # W_beta2 W^T                   [H, H]
    w_comb = wpre_ref[F + 2 * H:F + 4 * H, 0:H]     # linear_combine W^T            [2H, H]

    # --- GCN layer 1: A @ (X @ W1^T) + b1   (dropout: eval identity) ---
    h_v = jnp.dot(a, jnp.dot(x, w_gcn1, preferred_element_type=jnp.float32),
                  preferred_element_type=jnp.float32) + gcn1_b

    # --- GCN layer 2 + beta branch fused on the shared LHS h_v ---
    hv2 = jnp.dot(h_v, w_g2b1, preferred_element_type=jnp.float32)       # [S, 2H]
    h_nv = jnp.dot(a, hv2[:, 0:H], preferred_element_type=jnp.float32) + gcn2_b
    # predict_missing_info: gamma * r with r == 0 is dead; m_v = h_v + beta - h_N_v
    beta = jnp.tanh(hv2[:, H:2 * H]
                    + jnp.dot(h_nv, w_b2, preferred_element_type=jnp.float32) + bb)
    x_gnn = h_v + beta - h_nv                                             # [S, H]

    # --- Llama stack (single graph: sequence == nodes) ---
    row = jax.lax.broadcasted_iota(jnp.int32, (S, S), 0)
    col = jax.lax.broadcasted_iota(jnp.int32, (S, S), 1)
    causal = col <= row
    scale = jnp.float32(1.0 / (hd ** 0.5))

    h = x_gnn
    for li in range(L):                             # static unroll (2 layers)
        # input RMSNorm
        var = jnp.mean(h * h, axis=-1, keepdims=True)
        hn = h * jax.lax.rsqrt(var + eps) * ln1[li]

        # fused q | q_rot | k | k_rot | v projection: one MXU push per layer
        w_l = wattn_ref[li]                         # [H, 6H]
        qkvr = jnp.dot(hn, w_l[:, 0:5 * H], preferred_element_type=jnp.float32)
        q, qr = qkvr[:, 0:H], qkvr[:, H:2 * H]
        k, kr = qkvr[:, 2 * H:3 * H], qkvr[:, 3 * H:4 * H]
        v = qkvr[:, 4 * H:5 * H]
        # RoPE: rotate-half folded into the pre-rotated weight columns (exact)
        q = q * cos + qr * sin
        k = k * cos + kr * sin

        ctx_heads = []
        for hi in range(nh):                        # static unroll (4 heads)
            sl = slice(hi * hd, (hi + 1) * hd)
            scores = jax.lax.dot_general(
                q[:, sl], k[:, sl], (((1,), (1,)), ((), ())),
                preferred_element_type=jnp.float32) * scale
            scores = jnp.where(causal, scores, -1e30)
            m = jnp.max(scores, axis=-1, keepdims=True)
            p = jnp.exp(scores - m)
            p = p / jnp.sum(p, axis=-1, keepdims=True)   # exact softmax (PyTorch parity)
            ctx_heads.append(jnp.dot(p, v[:, sl], preferred_element_type=jnp.float32))
        # intra-tile lane concat of per-head ctx, then ONE output projection matmul
        ctx = jnp.concatenate(ctx_heads, axis=-1)   # [S, H]
        h = h + jnp.dot(ctx, w_l[:, 5 * H:6 * H], preferred_element_type=jnp.float32)

        # post-attention RMSNorm + SwiGLU MLP with fused gate|up weight
        var2 = jnp.mean(h * h, axis=-1, keepdims=True)
        hm = h * jax.lax.rsqrt(var2 + eps) * ln2[li]
        gu = jnp.dot(hm, wgu_ref[li], preferred_element_type=jnp.float32)   # [S, 8H]
        g, u = gu[:, 0:4 * H], gu[:, 4 * H:8 * H]   # split at lane 128 (tile-aligned)
        h = h + jnp.dot(g * jax.nn.sigmoid(g) * u, wd_ref[li],
                        preferred_element_type=jnp.float32)

    # final RMSNorm
    var3 = jnp.mean(h * h, axis=-1, keepdims=True)
    x_llama = h * jax.lax.rsqrt(var3 + eps) * fin_w

    # linear_combine([x_gnn, x_llama]): one matmul on the lane-concatenated input
    comb_in = jnp.concatenate([x_gnn, x_llama], axis=-1)                 # [S, 2H]
    o_ref[...] = jnp.dot(comb_in, w_comb, preferred_element_type=jnp.float32) + comb_b
    # output dropout: eval-mode identity


# ----------------------------- host-side glue (plain JAX) -----------------------------

def rope_tables(seq_len, head_dim, theta=10000.0):
    inv_freq = 1.0 / (theta ** (jnp.arange(0, head_dim, 2, dtype=jnp.float32) / head_dim))
    pos = jnp.arange(seq_len, dtype=jnp.float32)
    ang = pos[:, None] * inv_freq[None, :]
    emb = jnp.concatenate([ang, ang], axis=-1)
    return jnp.cos(emb), jnp.sin(emb)


def rotate_half_matrix(head_dim):
    # R such that q @ R == rotate_half(q) == concat([-q[:, half:], q[:, :half]], -1)
    half = head_dim // 2
    r = jnp.zeros((head_dim, head_dim), jnp.float32)
    idx = jnp.arange(half)
    r = r.at[idx + half, idx].set(-1.0)
    r = r.at[idx, idx + half].set(1.0)
    return r


def gcn_norm_adjacency(edge_index, num_nodes):
    # Assumes edge_index has no pre-existing self loops / duplicates (matches reference usage).
    src, dst = edge_index[0], edge_index[1]
    a = jnp.zeros((num_nodes, num_nodes), jnp.float32).at[dst, src].add(1.0)
    a = a + jnp.eye(num_nodes, dtype=jnp.float32)  # self loops
    deg = jnp.sum(a, axis=1)
    dinv = jax.lax.rsqrt(deg)
    return dinv[:, None] * a * dinv[None, :]


def prepare_fused_params(params, num_nodes):
    """One-time repack of the module weights into a handful of packed slabs."""
    H = params['hidden_dim']
    nh = params['num_heads']
    hd = H // nh
    L = len(params['llama_layers'])
    F = params['gcn1_w_t'].shape[0]
    S = num_nodes

    rot = rotate_half_matrix(hd)

    def rot_cols(w_t):   # apply the rotate-half matrix to each per-head column block
        return jnp.concatenate([w_t[:, i * hd:(i + 1) * hd] @ rot for i in range(nh)], axis=-1)

    attn_slabs, gu_slabs, d_slabs, ln1_rows, ln2_rows = [], [], [], [], []
    for lp in params['llama_layers']:
        attn_slabs.append(jnp.concatenate(
            [lp['wq_t'], rot_cols(lp['wq_t']), lp['wk_t'], rot_cols(lp['wk_t']),
             lp['wv_t'], lp['wo_t']], axis=-1))                                 # [H, 6H]
        gu_slabs.append(jnp.concatenate([lp['wg_t'], lp['wu_t']], axis=-1))     # [H, 8H]
        d_slabs.append(lp['wd_t'])                                              # [4H, H]
        ln1_rows.append(lp['ln1'].reshape(1, H))
        ln2_rows.append(lp['ln2'].reshape(1, H))

    # RoPE tables baked in once (depend only on the sequence length == num_nodes)
    cos, sin = rope_tables(S, hd)
    cos_full = jnp.tile(cos, (1, nh))    # [S, H]: every head uses the same table
    sin_full = jnp.tile(sin, (1, nh))

    vecs = jnp.concatenate(
        [cos_full, sin_full,
         params['gcn1_b'].reshape(1, H),
         params['gcn2_b'].reshape(1, H),
         (params['bb1'] + params['bb2']).reshape(1, H),
         params['comb_b'].reshape(1, H),
         params['final_norm'].reshape(1, H)]
        + ln1_rows + ln2_rows, axis=0)                                          # [2S+5+2L, H]

    def pad_cols(w):
        return jnp.pad(w, ((0, 0), (0, 2 * H - w.shape[1])))

    w_pre = jnp.concatenate(
        [pad_cols(params['gcn1_w_t']),                                          # rows [0, F)
         jnp.concatenate([params['gcn2_w_t'], params['wb1_t']], axis=-1),       # rows [F, F+H)
         pad_cols(params['wb2_t']),                                             # rows [F+H, F+2H)
         pad_cols(params['comb_w_t'])], axis=0)                                 # rows [F+2H, F+4H)

    return dict(
        hidden_dim=H, num_heads=nh, head_dim=hd, num_layers=L,
        input_dim=F, num_nodes=S,
        vecs=vecs,                            # [2S+5+2L, H]
        w_pre=w_pre,                          # [F+4H, 2H]
        w_attn=jnp.stack(attn_slabs, 0),      # [L, H, 6H]
        w_gu=jnp.stack(gu_slabs, 0),          # [L, H, 8H]
        w_d=jnp.stack(d_slabs, 0),            # [L, 4H, H]
    )


@functools.partial(jax.jit, static_argnames=("num_layers", "num_heads", "head_dim"))
def _mgllama_forward_jit(a_norm, x, vecs, w_pre, w_attn, w_gu, w_d,
                         *, num_layers, num_heads, head_dim):
    n = x.shape[0]
    hidden = vecs.shape[1]
    kern = functools.partial(
        _mgllama_fused_kernel, num_layers=num_layers, num_heads=num_heads,
        head_dim=head_dim, eps=1e-6)
    # Single fused kernel, no grid: 7 packed operands in, one [N, H] tensor out.
    # TODO(synk): on v7x, batch several graphs along a leading "parallel" grid axis
    # (dimension_semantics=("parallel",)) so both TensorCores are used.
    return pl.pallas_call(
        kern,
        out_shape=jax.ShapeDtypeStruct((n, hidden), jnp.float32),
    )(a_norm, x, vecs, w_pre, w_attn, w_gu, w_d)


def mgllama_forward(fused, x, edge_index=None, h_c=None, batch=None, a_norm=None):
    assert x.shape[0] == fused['num_nodes'], "prepare_fused_params was built for a different N"
    if a_norm is None:
        # data-dependent scatter-add; callers should precompute & cache this per graph
        a_norm = gcn_norm_adjacency(edge_index, x.shape[0])
    # batch=None (the module default) -> one graph == one Llama sequence.
    # TODO(synk): multi-graph batches need per-graph padding + cross-graph attention masking.
    out = _mgllama_forward_jit(
        a_norm, x, fused['vecs'], fused['w_pre'], fused['w_attn'],
        fused['w_gu'], fused['w_d'],
        num_layers=fused['num_layers'], num_heads=fused['num_heads'],
        head_dim=fused['head_dim'])
    if h_c is None:
        h, c = out, jnp.zeros_like(out)
    else:
        _, c = h_c
        h = out
    return h, c


# ----------------------------- pure-JAX reference (validation only) -----------------------------

def _mgllama_reference(params, x, a_norm, eps=1e-6):
    H = params['hidden_dim']
    nh = params['num_heads']
    hd = H // nh
    S = x.shape[0]

    h_v = a_norm @ (x @ params['gcn1_w_t']) + params['gcn1_b']
    h_nv = a_norm @ (h_v @ params['gcn2_w_t']) + params['gcn2_b']
    beta = jnp.tanh(h_v @ params['wb1_t'] + params['bb1']
                    + h_nv @ params['wb2_t'] + params['bb2'])
    x_gnn = h_v + beta - h_nv

    cos, sin = rope_tables(S, hd)
    causal = jnp.tril(jnp.ones((S, S), dtype=bool))

    def rot_half(t):
        return jnp.concatenate([-t[..., hd // 2:], t[..., :hd // 2]], axis=-1)

    h = x_gnn
    for lp in params['llama_layers']:
        hn = h * jax.lax.rsqrt(jnp.mean(h * h, -1, keepdims=True) + eps) * lp['ln1']
        q = (hn @ lp['wq_t']).reshape(S, nh, hd).transpose(1, 0, 2)
        k = (hn @ lp['wk_t']).reshape(S, nh, hd).transpose(1, 0, 2)
        v = (hn @ lp['wv_t']).reshape(S, nh, hd).transpose(1, 0, 2)
        q = q * cos[None] + rot_half(q) * sin[None]
        k = k * cos[None] + rot_half(k) * sin[None]
        s = jnp.einsum('hqd,hkd->hqk', q, k) / jnp.sqrt(jnp.float32(hd))
        s = jnp.where(causal[None], s, -jnp.inf)
        p = jax.nn.softmax(s, axis=-1)
        ctx = jnp.einsum('hqk,hkd->hqd', p, v).transpose(1, 0, 2).reshape(S, H)
        h = h + ctx @ lp['wo_t']
        hm = h * jax.lax.rsqrt(jnp.mean(h * h, -1, keepdims=True) + eps) * lp['ln2']
        g = hm @ lp['wg_t']
        u = hm @ lp['wu_t']
        h = h + (jax.nn.silu(g) * u) @ lp['wd_t']
    x_llama = h * jax.lax.rsqrt(jnp.mean(h * h, -1, keepdims=True) + eps) * params['final_norm']
    return jnp.concatenate([x_gnn, x_llama], -1) @ params['comb_w_t'] + params['comb_b']


# ----------------------------- parameter init -----------------------------

def init_params(key, input_dim, hidden_dim, num_heads=4, num_layers=2):
    inter = hidden_dim * 4
    keys = iter(jax.random.split(key, 128))

    def w(shape, scale=0.02):
        return scale * jax.random.normal(next(keys), shape, jnp.float32)

    params = dict(hidden_dim=hidden_dim, num_heads=num_heads)
    params['gcn1_w_t'] = w((input_dim, hidden_dim))
    params['gcn1_b'] = jnp.zeros((hidden_dim,), jnp.float32)
    params['gcn2_w_t'] = w((hidden_dim, hidden_dim))
    params['gcn2_b'] = jnp.zeros((hidden_dim,), jnp.float32)
    # W_gamma1/2 exist in the torch module but only feed gamma * 0 (dead code).
    params['wb1_t'] = w((hidden_dim, hidden_dim))
    params['bb1'] = w((hidden_dim,))
    params['wb2_t'] = w((hidden_dim, hidden_dim))
    params['bb2'] = w((hidden_dim,))
    layers = []
    for _ in range(num_layers):
        layers.append(dict(
            ln1=jnp.ones((hidden_dim,), jnp.float32),
            wq_t=w((hidden_dim, hidden_dim)),
            wk_t=w((hidden_dim, hidden_dim)),
            wv_t=w((hidden_dim, hidden_dim)),
            wo_t=w((hidden_dim, hidden_dim)),
            ln2=jnp.ones((hidden_dim,), jnp.float32),
            wg_t=w((hidden_dim, inter)),
            wu_t=w((hidden_dim, inter)),
            wd_t=w((inter, hidden_dim)),
        ))
    params['llama_layers'] = layers
    params['final_norm'] = jnp.ones((hidden_dim,), jnp.float32)
    params['comb_w_t'] = w((2 * hidden_dim, hidden_dim))
    params['comb_b'] = jnp.zeros((hidden_dim,), jnp.float32)
    return params


if __name__ == "__main__":
    key = jax.random.PRNGKey(0)
    k_param, k_x = jax.random.split(key)

    num_nodes, input_dim, hidden_dim = 8, 16, 32
    params = init_params(k_param, input_dim, hidden_dim)
    fused = prepare_fused_params(params, num_nodes)    # one-time weight repack (incl. RoPE tables)

    x = jax.random.normal(k_x, (num_nodes, input_dim), jnp.float32)
    # undirected ring graph: edges (i, i+1 mod N) in both directions
    src = jnp.arange(num_nodes, dtype=jnp.int32)
    dst = (src + 1) % num_nodes
    edge_index = jnp.stack([jnp.concatenate([src, dst]),
                            jnp.concatenate([dst, src])], axis=0)

    # adjacency depends only on the graph: build once and reuse across calls
    a_norm = gcn_norm_adjacency(edge_index, num_nodes)

    h, c = mgllama_forward(fused, x, edge_index, h_c=None, batch=None, a_norm=a_norm)
    jax.block_until_ready((h, c))
    assert h.shape == (num_nodes, hidden_dim)
    assert c.shape == (num_nodes, hidden_dim)
    assert bool(jnp.all(jnp.isfinite(h)))

    # sanity check against a pure-JAX reference of the original module
    ref = _mgllama_reference(params, x, a_norm)
    err = float(jnp.max(jnp.abs(h - ref)))
    assert err < 1e-2, f"kernel/reference mismatch: max abs err {err}"

    print("KERNEL_OK")
</pallas_src>

<mosaic_0001>
module attributes {stable_mosaic.version = 11 : i64} {
  func.func @_mgllama_fused_kernel(%arg0: memref<8x8xf32, #tpu.memory_space<vmem>>, %arg1: memref<8x16xf32, #tpu.memory_space<vmem>>, %arg2: memref<25x32xf32, #tpu.memory_space<vmem>>, %arg3: memref<144x64xf32, #tpu.memory_space<vmem>>, %arg4: memref<2x32x192xf32, #tpu.memory_space<vmem>>, %arg5: memref<2x32x256xf32, #tpu.memory_space<vmem>>, %arg6: memref<2x128x32xf32, #tpu.memory_space<vmem>>, %arg7: memref<8x32xf32, #tpu.memory_space<vmem>>) attributes {dimension_semantics = [], scalar_prefetch = 0 : i64, scratch_operands = 0 : i64, tpu.core_type = #tpu.core_type<tc>} {
    %c0 = arith.constant 0 : index
    %c0_0 = arith.constant 0 : index
    %0 = vector.load %arg0[%c0, %c0_0] : memref<8x8xf32, #tpu.memory_space<vmem>>, vector<8x8xf32>
    %c0_1 = arith.constant 0 : index
    %c0_2 = arith.constant 0 : index
    %1 = vector.load %arg1[%c0_1, %c0_2] : memref<8x16xf32, #tpu.memory_space<vmem>>, vector<8x16xf32>
    %c0_3 = arith.constant 0 : index
    %c0_4 = arith.constant 0 : index
    %2 = vector.load %arg2[%c0_3, %c0_4] : memref<25x32xf32, #tpu.memory_space<vmem>>, vector<8x32xf32>
    %c8 = arith.constant 8 : index
    %c0_5 = arith.constant 0 : index
    %3 = vector.load %arg2[%c8, %c0_5] : memref<25x32xf32, #tpu.memory_space<vmem>>, vector<8x32xf32>
    %c16 = arith.constant 16 : index
    %c0_6 = arith.constant 0 : index
    %4 = vector.load %arg2[%c16, %c0_6] : memref<25x32xf32, #tpu.memory_space<vmem>>, vector<1x32xf32>
    %c17 = arith.constant 17 : index
    %c0_7 = arith.constant 0 : index
    %5 = vector.load %arg2[%c17, %c0_7] : memref<25x32xf32, #tpu.memory_space<vmem>>, vector<1x32xf32>
    %c18 = arith.constant 18 : index
    %c0_8 = arith.constant 0 : index
    %6 = vector.load %arg2[%c18, %c0_8] : memref<25x32xf32, #tpu.memory_space<vmem>>, vector<1x32xf32>
    %c19 = arith.constant 19 : index
    %c0_9 = arith.constant 0 : index
    %7 = vector.load %arg2[%c19, %c0_9] : memref<25x32xf32, #tpu.memory_space<vmem>>, vector<1x32xf32>
    %c20 = arith.constant 20 : index
    %c0_10 = arith.constant 0 : index
    %8 = vector.load %arg2[%c20, %c0_10] : memref<25x32xf32, #tpu.memory_space<vmem>>, vector<1x32xf32>
    %c21 = arith.constant 21 : index
    %c0_11 = arith.constant 0 : index
    %9 = vector.load %arg2[%c21, %c0_11] : memref<25x32xf32, #tpu.memory_space<vmem>>, vector<1x32xf32>
    %c22 = arith.constant 22 : index
    %c0_12 = arith.constant 0 : index
    %10 = vector.load %arg2[%c22, %c0_12] : memref<25x32xf32, #tpu.memory_space<vmem>>, vector<1x32xf32>
    %c23 = arith.constant 23 : index
    %c0_13 = arith.constant 0 : index
    %11 = vector.load %arg2[%c23, %c0_13] : memref<25x32xf32, #tpu.memory_space<vmem>>, vector<1x32xf32>
    %c24 = arith.constant 24 : index
    %c0_14 = arith.constant 0 : index
    %12 = vector.load %arg2[%c24, %c0_14] : memref<25x32xf32, #tpu.memory_space<vmem>>, vector<1x32xf32>
    %c0_15 = arith.constant 0 : index
    %c0_16 = arith.constant 0 : index
    %13 = vector.load %arg3[%c0_15, %c0_16] : memref<144x64xf32, #tpu.memory_space<vmem>>, vector<16x32xf32>
    %c16_17 = arith.constant 16 : index
    %c0_18 = arith.constant 0 : index
    %14 = vector.load %arg3[%c16_17, %c0_18] : memref<144x64xf32, #tpu.memory_space<vmem>>, vector<32x64xf32>
    %c48 = arith.constant 48 : index
    %c0_19 = arith.constant 0 : index
    %15 = vector.load %arg3[%c48, %c0_19] : memref<144x64xf32, #tpu.memory_space<vmem>>, vector<32x32xf32>
    %c80 = arith.constant 80 : index
    %c0_20 = arith.constant 0 : index
    %16 = vector.load %arg3[%c80, %c0_20] : memref<144x64xf32, #tpu.memory_space<vmem>>, vector<64x32xf32>
    %cst = arith.constant dense<0.000000e+00> : vector<8x32xf32>
    %17 = tpu.matmul %1, %13, %cst {dimension_numbers = #tpu.dot_dimension_numbers<[1], [0], [0], [1], [0, 0, 1, 1], [], []>} : vector<8x16xf32>, vector<16x32xf32>, vector<8x32xf32> -> vector<8x32xf32>
    %cst_21 = arith.constant dense<0.000000e+00> : vector<8x32xf32>
    %18 = tpu.matmul %0, %17, %cst_21 {dimension_numbers = #tpu.dot_dimension_numbers<[1], [0], [0], [1], [0, 0, 1, 1], [], []>} : vector<8x8xf32>, vector<8x32xf32>, vector<8x32xf32> -> vector<8x32xf32>
    %19 = vector.broadcast %4 : vector<1x32xf32> to vector<8x32xf32>
    %20 = arith.addf %18, %19 : vector<8x32xf32>
    %cst_22 = arith.constant dense<0.000000e+00> : vector<8x64xf32>
    %21 = tpu.matmul %20, %14, %cst_22 {dimension_numbers = #tpu.dot_dimension_numbers<[1], [0], [0], [1], [0, 0, 1, 1], [], []>} : vector<8x32xf32>, vector<32x64xf32>, vector<8x64xf32> -> vector<8x64xf32>
    %22 = vector.extract_strided_slice %21 {offsets = [0, 0], sizes = [8, 32], strides = [1, 1]} : vector<8x64xf32> to vector<8x32xf32>
    %cst_23 = arith.constant dense<0.000000e+00> : vector<8x32xf32>
    %23 = tpu.matmul %0, %22, %cst_23 {dimension_numbers = #tpu.dot_dimension_numbers<[1], [0], [0], [1], [0, 0, 1, 1], [], []>} : vector<8x8xf32>, vector<8x32xf32>, vector<8x32xf32> -> vector<8x32xf32>
    %24 = vector.broadcast %5 : vector<1x32xf32> to vector<8x32xf32>
    %25 = arith.addf %23, %24 : vector<8x32xf32>
    %26 = vector.extract_strided_slice %21 {offsets = [0, 32], sizes = [8, 32], strides = [1, 1]} : vector<8x64xf32> to vector<8x32xf32>
    %cst_24 = arith.constant dense<0.000000e+00> : vector<8x32xf32>
    %27 = tpu.matmul %25, %15, %cst_24 {dimension_numbers = #tpu.dot_dimension_numbers<[1], [0], [0], [1], [0, 0, 1, 1], [], []>} : vector<8x32xf32>, vector<32x32xf32>, vector<8x32xf32> -> vector<8x32xf32>
    %28 = arith.addf %26, %27 : vector<8x32xf32>
    %29 = vector.broadcast %6 : vector<1x32xf32> to vector<8x32xf32>
    %30 = arith.addf %28, %29 : vector<8x32xf32>
    %31 = math.tanh %30 : vector<8x32xf32>
    %32 = arith.addf %20, %31 : vector<8x32xf32>
    %33 = arith.subf %32, %25 : vector<8x32xf32>
    %34 = tpu.iota {dimensions = array<i32: 0>} : vector<8x8xi32>
    %35 = tpu.iota {dimensions = array<i32: 1>} : vector<8x8xi32>
    %36 = arith.cmpi sle, %35, %34 : vector<8x8xi32>
    %37 = arith.mulf %33, %33 : vector<8x32xf32>
    %cst_25 = arith.constant dense<0.000000e+00> : vector<8xf32>
    %38 = vector.multi_reduction <add>, %37, %cst_25 [1] : vector<8x32xf32> to vector<8xf32>
    %39 = vector.shape_cast %38 : vector<8xf32> to vector<8x1xf32>
    %cst_26 = arith.constant 3.200000e+01 : f32
    %40 = vector.broadcast %cst_26 : f32 to vector<8x1xf32>
    %41 = arith.divf %39, %40 : vector<8x1xf32>
    %cst_27 = arith.constant 9.99999997E-7 : f32
    %42 = vector.broadcast %cst_27 : f32 to vector<8x1xf32>
    %43 = arith.addf %41, %42 : vector<8x1xf32>
    %44 = math.rsqrt %43 : vector<8x1xf32>
    %45 = vector.broadcast %44 : vector<8x1xf32> to vector<8x32xf32>
    %46 = arith.mulf %33, %45 : vector<8x32xf32>
    %47 = vector.broadcast %9 : vector<1x32xf32> to vector<8x32xf32>
    %48 = arith.mulf %46, %47 : vector<8x32xf32>
    %c0_28 = arith.constant 0 : index
    %c0_29 = arith.constant 0 : index
    %c0_30 = arith.constant 0 : index
    %49 = vector.load %arg4[%c0_28, %c0_29, %c0_30] : memref<2x32x192xf32, #tpu.memory_space<vmem>>, vector<1x32x192xf32>
    %50 = vector.shape_cast %49 : vector<1x32x192xf32> to vector<32x192xf32>
    %51 = vector.extract_strided_slice %50 {offsets = [0, 0], sizes = [32, 160], strides = [1, 1]} : vector<32x192xf32> to vector<32x160xf32>
    %cst_31 = arith.constant dense<0.000000e+00> : vector<8x160xf32>
    %52 = tpu.matmul %48, %51, %cst_31 {dimension_numbers = #tpu.dot_dimension_numbers<[1], [0], [0], [1], [0, 0, 1, 1], [], []>} : vector<8x32xf32>, vector<32x160xf32>, vector<8x160xf32> -> vector<8x160xf32>
    %53 = vector.extract_strided_slice %52 {offsets = [0, 0], sizes = [8, 32], strides = [1, 1]} : vector<8x160xf32> to vector<8x32xf32>
    %54 = vector.extract_strided_slice %52 {offsets = [0, 32], sizes = [8, 32], strides = [1, 1]} : vector<8x160xf32> to vector<8x32xf32>
    %55 = vector.extract_strided_slice %52 {offsets = [0, 64], sizes = [8, 32], strides = [1, 1]} : vector<8x160xf32> to vector<8x32xf32>
    %56 = vector.extract_strided_slice %52 {offsets = [0, 96], sizes = [8, 32], strides = [1, 1]} : vector<8x160xf32> to vector<8x32xf32>
    %57 = vector.extract_strided_slice %52 {offsets = [0, 128], sizes = [8, 32], strides = [1, 1]} : vector<8x160xf32> to vector<8x32xf32>
    %58 = arith.mulf %53, %2 : vector<8x32xf32>
    %59 = arith.mulf %54, %3 : vector<8x32xf32>
    %60 = arith.addf %58, %59 : vector<8x32xf32>
    %61 = arith.mulf %55, %2 : vector<8x32xf32>
    %62 = arith.mulf %56, %3 : vector<8x32xf32>
    %63 = arith.addf %61, %62 : vector<8x32xf32>
    %64 = vector.extract_strided_slice %60 {offsets = [0, 0], sizes = [8, 8], strides = [1, 1]} : vector<8x32xf32> to vector<8x8xf32>
    %65 = vector.extract_strided_slice %63 {offsets = [0, 0], sizes = [8, 8], strides = [1, 1]} : vector<8x32xf32> to vector<8x8xf32>
    %cst_32 = arith.constant dense<0.000000e+00> : vector<8x8xf32>
    %66 = tpu.matmul %64, %65, %cst_32 {dimension_numbers = #tpu.dot_dimension_numbers<[1], [1], [0], [0], [0, 0, 1, 0], [], []>} : vector<8x8xf32>, vector<8x8xf32>, vector<8x8xf32> -> vector<8x8xf32>
    %cst_33 = arith.constant 0.353553385 : f32
    %67 = vector.broadcast %cst_33 : f32 to vector<8x8xf32>
    %68 = arith.mulf %66, %67 : vector<8x8xf32>
    %cst_34 = arith.constant -1.000000e+30 : f32
    %69 = vector.broadcast %cst_34 : f32 to vector<8x8xf32>
    %70 = arith.select %36, %68, %69 : vector<8x8xi1>, vector<8x8xf32>
    %cst_35 = arith.constant dense<0xFF800000> : vector<8xf32>
    %71 = vector.multi_reduction <maximumf>, %70, %cst_35 [1] : vector<8x8xf32> to vector<8xf32>
    %72 = vector.shape_cast %71 : vector<8xf32> to vector<8x1xf32>
    %73 = vector.broadcast %72 : vector<8x1xf32> to vector<8x8xf32>
    %74 = arith.subf %70, %73 : vector<8x8xf32>
    %75 = math.exp %74 : vector<8x8xf32>
    %cst_36 = arith.constant dense<0.000000e+00> : vector<8xf32>
    %76 = vector.multi_reduction <add>, %75, %cst_36 [1] : vector<8x8xf32> to vector<8xf32>
    %77 = vector.shape_cast %76 : vector<8xf32> to vector<8x1xf32>
    %78 = vector.broadcast %77 : vector<8x1xf32> to vector<8x8xf32>
    %79 = arith.divf %75, %78 : vector<8x8xf32>
    %80 = vector.extract_strided_slice %57 {offsets = [0, 0], sizes = [8, 8], strides = [1, 1]} : vector<8x32xf32> to vector<8x8xf32>
    %cst_37 = arith.constant dense<0.000000e+00> : vector<8x8xf32>
    %81 = tpu.matmul %79, %80, %cst_37 {dimension_numbers = #tpu.dot_dimension_numbers<[1], [0], [0], [1], [0, 0, 1, 1], [], []>} : vector<8x8xf32>, vector<8x8xf32>, vector<8x8xf32> -> vector<8x8xf32>
    %82 = vector.extract_strided_slice %60 {offsets = [0, 8], sizes = [8, 8], strides = [1, 1]} : vector<8x32xf32> to vector<8x8xf32>
    %83 = vector.extract_strided_slice %63 {offsets = [0, 8], sizes = [8, 8], strides = [1, 1]} : vector<8x32xf32> to vector<8x8xf32>
    %cst_38 = arith.constant dense<0.000000e+00> : vector<8x8xf32>
    %84 = tpu.matmul %82, %83, %cst_38 {dimension_numbers = #tpu.dot_dimension_numbers<[1], [1], [0], [0], [0, 0, 1, 0], [], []>} : vector<8x8xf32>, vector<8x8xf32>, vector<8x8xf32> -> vector<8x8xf32>
    %cst_39 = arith.constant 0.353553385 : f32
    %85 = vector.broadcast %cst_39 : f32 to vector<8x8xf32>
    %86 = arith.mulf %84, %85 : vector<8x8xf32>
    %cst_40 = arith.constant -1.000000e+30 : f32
    %87 = vector.broadcast %cst_40 : f32 to vector<8x8xf32>
    %88 = arith.select %36, %86, %87 : vector<8x8xi1>, vector<8x8xf32>
    %cst_41 = arith.constant dense<0xFF800000> : vector<8xf32>
    %89 = vector.multi_reduction <maximumf>, %88, %cst_41 [1] : vector<8x8xf32> to vector<8xf32>
    %90 = vector.shape_cast %89 : vector<8xf32> to vector<8x1xf32>
    %91 = vector.broadcast %90 : vector<8x1xf32> to vector<8x8xf32>
    %92 = arith.subf %88, %91 : vector<8x8xf32>
    %93 = math.exp %92 : vector<8x8xf32>
    %cst_42 = arith.constant dense<0.000000e+00> : vector<8xf32>
    %94 = vector.multi_reduction <add>, %93, %cst_42 [1] : vector<8x8xf32> to vector<8xf32>
    %95 = vector.shape_cast %94 : vector<8xf32> to vector<8x1xf32>
    %96 = vector.broadcast %95 : vector<8x1xf32> to vector<8x8xf32>
    %97 = arith.divf %93, %96 : vector<8x8xf32>
    %98 = vector.extract_strided_slice %57 {offsets = [0, 8], sizes = [8, 8], strides = [1, 1]} : vector<8x32xf32> to vector<8x8xf32>
    %cst_43 = arith.constant dense<0.000000e+00> : vector<8x8xf32>
    %99 = tpu.matmul %97, %98, %cst_43 {dimension_numbers = #tpu.dot_dimension_numbers<[1], [0], [0], [1], [0, 0, 1, 1], [], []>} : vector<8x8xf32>, vector<8x8xf32>, vector<8x8xf32> -> vector<8x8xf32>
    %100 = vector.extract_strided_slice %60 {offsets = [0, 16], sizes = [8, 8], strides = [1, 1]} : vector<8x32xf32> to vector<8x8xf32>
    %101 = vector.extract_strided_slice %63 {offsets = [0, 16], sizes = [8, 8], strides = [1, 1]} : vector<8x32xf32> to vector<8x8xf32>
    %cst_44 = arith.constant dense<0.000000e+00> : vector<8x8xf32>
    %102 = tpu.matmul %100, %101, %cst_44 {dimension_numbers = #tpu.dot_dimension_numbers<[1], [1], [0], [0], [0, 0, 1, 0], [], []>} : vector<8x8xf32>, vector<8x8xf32>, vector<8x8xf32> -> vector<8x8xf32>
    %cst_45 = arith.constant 0.353553385 : f32
    %103 = vector.broadcast %cst_45 : f32 to vector<8x8xf32>
    %104 = arith.mulf %102, %103 : vector<8x8xf32>
    %cst_46 = arith.constant -1.000000e+30 : f32
    %105 = vector.broadcast %cst_46 : f32 to vector<8x8xf32>
    %106 = arith.select %36, %104, %105 : vector<8x8xi1>, vector<8x8xf32>
    %cst_47 = arith.constant dense<0xFF800000> : vector<8xf32>
    %107 = vector.multi_reduction <maximumf>, %106, %cst_47 [1] : vector<8x8xf32> to vector<8xf32>
    %108 = vector.shape_cast %107 : vector<8xf32> to vector<8x1xf32>
    %109 = vector.broadcast %108 : vector<8x1xf32> to vector<8x8xf32>
    %110 = arith.subf %106, %109 : vector<8x8xf32>
    %111 = math.exp %110 : vector<8x8xf32>
    %cst_48 = arith.constant dense<0.000000e+00> : vector<8xf32>
    %112 = vector.multi_reduction <add>, %111, %cst_48 [1] : vector<8x8xf32> to vector<8xf32>
    %113 = vector.shape_cast %112 : vector<8xf32> to vector<8x1xf32>
    %114 = vector.broadcast %113 : vector<8x1xf32> to vector<8x8xf32>
    %115 = arith.divf %111, %114 : vector<8x8xf32>
    %116 = vector.extract_strided_slice %57 {offsets = [0, 16], sizes = [8, 8], strides = [1, 1]} : vector<8x32xf32> to vector<8x8xf32>
    %cst_49 = arith.constant dense<0.000000e+00> : vector<8x8xf32>
    %117 = tpu.matmul %115, %116, %cst_49 {dimension_numbers = #tpu.dot_dimension_numbers<[1], [0], [0], [1], [0, 0, 1, 1], [], []>} : vector<8x8xf32>, vector<8x8xf32>, vector<8x8xf32> -> vector<8x8xf32>
    %118 = vector.extract_strided_slice %60 {offsets = [0, 24], sizes = [8, 8], strides = [1, 1]} : vector<8x32xf32> to vector<8x8xf32>
    %119 = vector.extract_strided_slice %63 {offsets = [0, 24], sizes = [8, 8], strides = [1, 1]} : vector<8x32xf32> to vector<8x8xf32>
    %cst_50 = arith.constant dense<0.000000e+00> : vector<8x8xf32>
    %120 = tpu.matmul %118, %119, %cst_50 {dimension_numbers = #tpu.dot_dimension_numbers<[1], [1], [0], [0], [0, 0, 1, 0], [], []>} : vector<8x8xf32>, vector<8x8xf32>, vector<8x8xf32> -> vector<8x8xf32>
    %cst_51 = arith.constant 0.353553385 : f32
    %121 = vector.broadcast %cst_51 : f32 to vector<8x8xf32>
    %122 = arith.mulf %120, %121 : vector<8x8xf32>
    %cst_52 = arith.constant -1.000000e+30 : f32
    %123 = vector.broadcast %cst_52 : f32 to vector<8x8xf32>
    %124 = arith.select %36, %122, %123 : vector<8x8xi1>, vector<8x8xf32>
    %cst_53 = arith.constant dense<0xFF800000> : vector<8xf32>
    %125 = vector.multi_reduction <maximumf>, %124, %cst_53 [1] : vector<8x8xf32> to vector<8xf32>
    %126 = vector.shape_cast %125 : vector<8xf32> to vector<8x1xf32>
    %127 = vector.broadcast %126 : vector<8x1xf32> to vector<8x8xf32>
    %128 = arith.subf %124, %127 : vector<8x8xf32>
    %129 = math.exp %128 : vector<8x8xf32>
    %cst_54 = arith.constant dense<0.000000e+00> : vector<8xf32>
    %130 = vector.multi_reduction <add>, %129, %cst_54 [1] : vector<8x8xf32> to vector<8xf32>
    %131 = vector.shape_cast %130 : vector<8xf32> to vector<8x1xf32>
    %132 = vector.broadcast %131 : vector<8x1xf32> to vector<8x8xf32>
    %133 = arith.divf %129, %132 : vector<8x8xf32>
    %134 = vector.extract_strided_slice %57 {offsets = [0, 24], sizes = [8, 8], strides = [1, 1]} : vector<8x32xf32> to vector<8x8xf32>
    %cst_55 = arith.constant dense<0.000000e+00> : vector<8x8xf32>
    %135 = tpu.matmul %133, %134, %cst_55 {dimension_numbers = #tpu.dot_dimension_numbers<[1], [0], [0], [1], [0, 0, 1, 1], [], []>} : vector<8x8xf32>, vector<8x8xf32>, vector<8x8xf32> -> vector<8x8xf32>
    %136 = tpu.concatenate %81, %99, %117, %135 in 1 : vector<8x8xf32>, vector<8x8xf32>, vector<8x8xf32>, vector<8x8xf32> -> vector<8x32xf32>
    %137 = vector.extract_strided_slice %50 {offsets = [0, 160], sizes = [32, 32], strides = [1, 1]} : vector<32x192xf32> to vector<32x32xf32>
    %cst_56 = arith.constant dense<0.000000e+00> : vector<8x32xf32>
    %138 = tpu.matmul %136, %137, %cst_56 {dimension_numbers = #tpu.dot_dimension_numbers<[1], [0], [0], [1], [0, 0, 1, 1], [], []>} : vector<8x32xf32>, vector<32x32xf32>, vector<8x32xf32> -> vector<8x32xf32>
    %139 = arith.addf %33, %138 : vector<8x32xf32>
    %140 = arith.mulf %139, %139 : vector<8x32xf32>
    %cst_57 = arith.constant dense<0.000000e+00> : vector<8xf32>
    %141 = vector.multi_reduction <add>, %140, %cst_57 [1] : vector<8x32xf32> to vector<8xf32>
    %142 = vector.shape_cast %141 : vector<8xf32> to vector<8x1xf32>
    %cst_58 = arith.constant 3.200000e+01 : f32
    %143 = vector.broadcast %cst_58 : f32 to vector<8x1xf32>
    %144 = arith.divf %142, %143 : vector<8x1xf32>
    %cst_59 = arith.constant 9.99999997E-7 : f32
    %145 = vector.broadcast %cst_59 : f32 to vector<8x1xf32>
    %146 = arith.addf %144, %145 : vector<8x1xf32>
    %147 = math.rsqrt %146 : vector<8x1xf32>
    %148 = vector.broadcast %147 : vector<8x1xf32> to vector<8x32xf32>
    %149 = arith.mulf %139, %148 : vector<8x32xf32>
    %150 = vector.broadcast %11 : vector<1x32xf32> to vector<8x32xf32>
    %151 = arith.mulf %149, %150 : vector<8x32xf32>
    %c0_60 = arith.constant 0 : index
    %c0_61 = arith.constant 0 : index
    %c0_62 = arith.constant 0 : index
    %152 = vector.load %arg5[%c0_60, %c0_61, %c0_62] : memref<2x32x256xf32, #tpu.memory_space<vmem>>, vector<1x32x256xf32>
    %153 = vector.shape_cast %152 : vector<1x32x256xf32> to vector<32x256xf32>
    %cst_63 = arith.constant dense<0.000000e+00> : vector<8x256xf32>
    %154 = tpu.matmul %151, %153, %cst_63 {dimension_numbers = #tpu.dot_dimension_numbers<[1], [0], [0], [1], [0, 0, 1, 1], [], []>} : vector<8x32xf32>, vector<32x256xf32>, vector<8x256xf32> -> vector<8x256xf32>
    %155 = vector.extract_strided_slice %154 {offsets = [0, 0], sizes = [8, 128], strides = [1, 1]} : vector<8x256xf32> to vector<8x128xf32>
    %156 = vector.extract_strided_slice %154 {offsets = [0, 128], sizes = [8, 128], strides = [1, 1]} : vector<8x256xf32> to vector<8x128xf32>
    %157 = arith.negf %155 : vector<8x128xf32>
    %158 = math.exp %157 : vector<8x128xf32>
    %cst_64 = arith.constant 1.000000e+00 : f32
    %159 = vector.broadcast %cst_64 : f32 to vector<8x128xf32>
    %160 = arith.addf %159, %158 : vector<8x128xf32>
    %161 = arith.divf %159, %160 : vector<8x128xf32>
    %162 = arith.mulf %155, %161 : vector<8x128xf32>
    %163 = arith.mulf %162, %156 : vector<8x128xf32>
    %c0_65 = arith.constant 0 : index
    %c0_66 = arith.constant 0 : index
    %c0_67 = arith.constant 0 : index
    %164 = vector.load %arg6[%c0_65, %c0_66, %c0_67] : memref<2x128x32xf32, #tpu.memory_space<vmem>>, vector<1x128x32xf32>
    %165 = vector.shape_cast %164 : vector<1x128x32xf32> to vector<128x32xf32>
    %cst_68 = arith.constant dense<0.000000e+00> : vector<8x32xf32>
    %166 = tpu.matmul %163, %165, %cst_68 {dimension_numbers = #tpu.dot_dimension_numbers<[1], [0], [0], [1], [0, 0, 1, 1], [], []>} : vector<8x128xf32>, vector<128x32xf32>, vector<8x32xf32> -> vector<8x32xf32>
    %167 = arith.addf %139, %166 : vector<8x32xf32>
    %168 = arith.mulf %167, %167 : vector<8x32xf32>
    %cst_69 = arith.constant dense<0.000000e+00> : vector<8xf32>
    %169 = vector.multi_reduction <add>, %168, %cst_69 [1] : vector<8x32xf32> to vector<8xf32>
    %170 = vector.shape_cast %169 : vector<8xf32> to vector<8x1xf32>
    %cst_70 = arith.constant 3.200000e+01 : f32
    %171 = vector.broadcast %cst_70 : f32 to vector<8x1xf32>
    %172 = arith.divf %170, %171 : vector<8x1xf32>
    %cst_71 = arith.constant 9.99999997E-7 : f32
    %173 = vector.broadcast %cst_71 : f32 to vector<8x1xf32>
    %174 = arith.addf %172, %173 : vector<8x1xf32>
    %175 = math.rsqrt %174 : vector<8x1xf32>
    %176 = vector.broadcast %175 : vector<8x1xf32> to vector<8x32xf32>
    %177 = arith.mulf %167, %176 : vector<8x32xf32>
    %178 = vector.broadcast %10 : vector<1x32xf32> to vector<8x32xf32>
    %179 = arith.mulf %177, %178 : vector<8x32xf32>
    %c1 = arith.constant 1 : index
    %c0_72 = arith.constant 0 : index
    %c0_73 = arith.constant 0 : index
    %180 = vector.load %arg4[%c1, %c0_72, %c0_73] : memref<2x32x192xf32, #tpu.memory_space<vmem>>, vector<1x32x192xf32>
    %181 = vector.shape_cast %180 : vector<1x32x192xf32> to vector<32x192xf32>
    %182 = vector.extract_strided_slice %181 {offsets = [0, 0], sizes = [32, 160], strides = [1, 1]} : vector<32x192xf32> to vector<32x160xf32>
    %cst_74 = arith.constant dense<0.000000e+00> : vector<8x160xf32>
    %183 = tpu.matmul %179, %182, %cst_74 {dimension_numbers = #tpu.dot_dimension_numbers<[1], [0], [0], [1], [0, 0, 1, 1], [], []>} : vector<8x32xf32>, vector<32x160xf32>, vector<8x160xf32> -> vector<8x160xf32>
    %184 = vector.extract_strided_slice %183 {offsets = [0, 0], sizes = [8, 32], strides = [1, 1]} : vector<8x160xf32> to vector<8x32xf32>
    %185 = vector.extract_strided_slice %183 {offsets = [0, 32], sizes = [8, 32], strides = [1, 1]} : vector<8x160xf32> to vector<8x32xf32>
    %186 = vector.extract_strided_slice %183 {offsets = [0, 64], sizes = [8, 32], strides = [1, 1]} : vector<8x160xf32> to vector<8x32xf32>
    %187 = vector.extract_strided_slice %183 {offsets = [0, 96], sizes = [8, 32], strides = [1, 1]} : vector<8x160xf32> to vector<8x32xf32>
    %188 = vector.extract_strided_slice %183 {offsets = [0, 128], sizes = [8, 32], strides = [1, 1]} : vector<8x160xf32> to vector<8x32xf32>
    %189 = arith.mulf %184, %2 : vector<8x32xf32>
    %190 = arith.mulf %185, %3 : vector<8x32xf32>
    %191 = arith.addf %189, %190 : vector<8x32xf32>
    %192 = arith.mulf %186, %2 : vector<8x32xf32>
    %193 = arith.mulf %187, %3 : vector<8x32xf32>
    %194 = arith.addf %192, %193 : vector<8x32xf32>
    %195 = vector.extract_strided_slice %191 {offsets = [0, 0], sizes = [8, 8], strides = [1, 1]} : vector<8x32xf32> to vector<8x8xf32>
    %196 = vector.extract_strided_slice %194 {offsets = [0, 0], sizes = [8, 8], strides = [1, 1]} : vector<8x32xf32> to vector<8x8xf32>
    %cst_75 = arith.constant dense<0.000000e+00> : vector<8x8xf32>
    %197 = tpu.matmul %195, %196, %cst_75 {dimension_numbers = #tpu.dot_dimension_numbers<[1], [1], [0], [0], [0, 0, 1, 0], [], []>} : vector<8x8xf32>, vector<8x8xf32>, vector<8x8xf32> -> vector<8x8xf32>
    %cst_76 = arith.constant 0.353553385 : f32
    %198 = vector.broadcast %cst_76 : f32 to vector<8x8xf32>
    %199 = arith.mulf %197, %198 : vector<8x8xf32>
    %cst_77 = arith.constant -1.000000e+30 : f32
    %200 = vector.broadcast %cst_77 : f32 to vector<8x8xf32>
    %201 = arith.select %36, %199, %200 : vector<8x8xi1>, vector<8x8xf32>
    %cst_78 = arith.constant dense<0xFF800000> : vector<8xf32>
    %202 = vector.multi_reduction <maximumf>, %201, %cst_78 [1] : vector<8x8xf32> to vector<8xf32>
    %203 = vector.shape_cast %202 : vector<8xf32> to vector<8x1xf32>
    %204 = vector.broadcast %203 : vector<8x1xf32> to vector<8x8xf32>
    %205 = arith.subf %201, %204 : vector<8x8xf32>
    %206 = math.exp %205 : vector<8x8xf32>
    %cst_79 = arith.constant dense<0.000000e+00> : vector<8xf32>
    %207 = vector.multi_reduction <add>, %206, %cst_79 [1] : vector<8x8xf32> to vector<8xf32>
    %208 = vector.shape_cast %207 : vector<8xf32> to vector<8x1xf32>
    %209 = vector.broadcast %208 : vector<8x1xf32> to vector<8x8xf32>
    %210 = arith.divf %206, %209 : vector<8x8xf32>
    %211 = vector.extract_strided_slice %188 {offsets = [0, 0], sizes = [8, 8], strides = [1, 1]} : vector<8x32xf32> to vector<8x8xf32>
    %cst_80 = arith.constant dense<0.000000e+00> : vector<8x8xf32>
    %212 = tpu.matmul %210, %211, %cst_80 {dimension_numbers = #tpu.dot_dimension_numbers<[1], [0], [0], [1], [0, 0, 1, 1], [], []>} : vector<8x8xf32>, vector<8x8xf32>, vector<8x8xf32> -> vector<8x8xf32>
    %213 = vector.extract_strided_slice %191 {offsets = [0, 8], sizes = [8, 8], strides = [1, 1]} : vector<8x32xf32> to vector<8x8xf32>
    %214 = vector.extract_strided_slice %194 {offsets = [0, 8], sizes = [8, 8], strides = [1, 1]} : vector<8x32xf32> to vector<8x8xf32>
    %cst_81 = arith.constant dense<0.000000e+00> : vector<8x8xf32>
    %215 = tpu.matmul %213, %214, %cst_81 {dimension_numbers = #tpu.dot_dimension_numbers<[1], [1], [0], [0], [0, 0, 1, 0], [], []>} : vector<8x8xf32>, vector<8x8xf32>, vector<8x8xf32> -> vector<8x8xf32>
    %cst_82 = arith.constant 0.353553385 : f32
    %216 = vector.broadcast %cst_82 : f32 to vector<8x8xf32>
    %217 = arith.mulf %215, %216 : vector<8x8xf32>
    %cst_83 = arith.constant -1.000000e+30 : f32
    %218 = vector.broadcast %cst_83 : f32 to vector<8x8xf32>
    %219 = arith.select %36, %217, %218 : vector<8x8xi1>, vector<8x8xf32>
    %cst_84 = arith.constant dense<0xFF800000> : vector<8xf32>
    %220 = vector.multi_reduction <maximumf>, %219, %cst_84 [1] : vector<8x8xf32> to vector<8xf32>
    %221 = vector.shape_cast %220 : vector<8xf32> to vector<8x1xf32>
    %222 = vector.broadcast %221 : vector<8x1xf32> to vector<8x8xf32>
    %223 = arith.subf %219, %222 : vector<8x8xf32>
    %224 = math.exp %223 : vector<8x8xf32>
    %cst_85 = arith.constant dense<0.000000e+00> : vector<8xf32>
    %225 = vector.multi_reduction <add>, %224, %cst_85 [1] : vector<8x8xf32> to vector<8xf32>
    %226 = vector.shape_cast %225 : vector<8xf32> to vector<8x1xf32>
    %227 = vector.broadcast %226 : vector<8x1xf32> to vector<8x8xf32>
    %228 = arith.divf %224, %227 : vector<8x8xf32>
    %229 = vector.extract_strided_slice %188 {offsets = [0, 8], sizes = [8, 8], strides = [1, 1]} : vector<8x32xf32> to vector<8x8xf32>
    %cst_86 = arith.constant dense<0.000000e+00> : vector<8x8xf32>
    %230 = tpu.matmul %228, %229, %cst_86 {dimension_numbers = #tpu.dot_dimension_numbers<[1], [0], [0], [1], [0, 0, 1, 1], [], []>} : vector<8x8xf32>, vector<8x8xf32>, vector<8x8xf32> -> vector<8x8xf32>
    %231 = vector.extract_strided_slice %191 {offsets = [0, 16], sizes = [8, 8], strides = [1, 1]} : vector<8x32xf32> to vector<8x8xf32>
    %232 = vector.extract_strided_slice %194 {offsets = [0, 16], sizes = [8, 8], strides = [1, 1]} : vector<8x32xf32> to vector<8x8xf32>
    %cst_87 = arith.constant dense<0.000000e+00> : vector<8x8xf32>
    %233 = tpu.matmul %231, %232, %cst_87 {dimension_numbers = #tpu.dot_dimension_numbers<[1], [1], [0], [0], [0, 0, 1, 0], [], []>} : vector<8x8xf32>, vector<8x8xf32>, vector<8x8xf32> -> vector<8x8xf32>
    %cst_88 = arith.constant 0.353553385 : f32
    %234 = vector.broadcast %cst_88 : f32 to vector<8x8xf32>
    %235 = arith.mulf %233, %234 : vector<8x8xf32>
    %cst_89 = arith.constant -1.000000e+30 : f32
    %236 = vector.broadcast %cst_89 : f32 to vector<8x8xf32>
    %237 = arith.select %36, %235, %236 : vector<8x8xi1>, vector<8x8xf32>
    %cst_90 = arith.constant dense<0xFF800000> : vector<8xf32>
    %238 = vector.multi_reduction <maximumf>, %237, %cst_90 [1] : vector<8x8xf32> to vector<8xf32>
    %239 = vector.shape_cast %238 : vector<8xf32> to vector<8x1xf32>
    %240 = vector.broadcast %239 : vector<8x1xf32> to vector<8x8xf32>
    %241 = arith.subf %237, %240 : vector<8x8xf32>
    %242 = math.exp %241 : vector<8x8xf32>
    %cst_91 = arith.constant dense<0.000000e+00> : vector<8xf32>
    %243 = vector.multi_reduction <add>, %242, %cst_91 [1] : vector<8x8xf32> to vector<8xf32>
    %244 = vector.shape_cast %243 : vector<8xf32> to vector<8x1xf32>
    %245 = vector.broadcast %244 : vector<8x1xf32> to vector<8x8xf32>
    %246 = arith.divf %242, %245 : vector<8x8xf32>
    %247 = vector.extract_strided_slice %188 {offsets = [0, 16], sizes = [8, 8], strides = [1, 1]} : vector<8x32xf32> to vector<8x8xf32>
    %cst_92 = arith.constant dense<0.000000e+00> : vector<8x8xf32>
    %248 = tpu.matmul %246, %247, %cst_92 {dimension_numbers = #tpu.dot_dimension_numbers<[1], [0], [0], [1], [0, 0, 1, 1], [], []>} : vector<8x8xf32>, vector<8x8xf32>, vector<8x8xf32> -> vector<8x8xf32>
    %249 = vector.extract_strided_slice %191 {offsets = [0, 24], sizes = [8, 8], strides = [1, 1]} : vector<8x32xf32> to vector<8x8xf32>
    %250 = vector.extract_strided_slice %194 {offsets = [0, 24], sizes = [8, 8], strides = [1, 1]} : vector<8x32xf32> to vector<8x8xf32>
    %cst_93 = arith.constant dense<0.000000e+00> : vector<8x8xf32>
    %251 = tpu.matmul %249, %250, %cst_93 {dimension_numbers = #tpu.dot_dimension_numbers<[1], [1], [0], [0], [0, 0, 1, 0], [], []>} : vector<8x8xf32>, vector<8x8xf32>, vector<8x8xf32> -> vector<8x8xf32>
    %cst_94 = arith.constant 0.353553385 : f32
    %252 = vector.broadcast %cst_94 : f32 to vector<8x8xf32>
    %253 = arith.mulf %251, %252 : vector<8x8xf32>
    %cst_95 = arith.constant -1.000000e+30 : f32
    %254 = vector.broadcast %cst_95 : f32 to vector<8x8xf32>
    %255 = arith.select %36, %253, %254 : vector<8x8xi1>, vector<8x8xf32>
    %cst_96 = arith.constant dense<0xFF800000> : vector<8xf32>
    %256 = vector.multi_reduction <maximumf>, %255, %cst_96 [1] : vector<8x8xf32> to vector<8xf32>
    %257 = vector.shape_cast %256 : vector<8xf32> to vector<8x1xf32>
    %258 = vector.broadcast %257 : vector<8x1xf32> to vector<8x8xf32>
    %259 = arith.subf %255, %258 : vector<8x8xf32>
    %260 = math.exp %259 : vector<8x8xf32>
    %cst_97 = arith.constant dense<0.000000e+00> : vector<8xf32>
    %261 = vector.multi_reduction <add>, %260, %cst_97 [1] : vector<8x8xf32> to vector<8xf32>
    %262 = vector.shape_cast %261 : vector<8xf32> to vector<8x1xf32>
    %263 = vector.broadcast %262 : vector<8x1xf32> to vector<8x8xf32>
    %264 = arith.divf %260, %263 : vector<8x8xf32>
    %265 = vector.extract_strided_slice %188 {offsets = [0, 24], sizes = [8, 8], strides = [1, 1]} : vector<8x32xf32> to vector<8x8xf32>
    %cst_98 = arith.constant dense<0.000000e+00> : vector<8x8xf32>
    %266 = tpu.matmul %264, %265, %cst_98 {dimension_numbers = #tpu.dot_dimension_numbers<[1], [0], [0], [1], [0, 0, 1, 1], [], []>} : vector<8x8xf32>, vector<8x8xf32>, vector<8x8xf32> -> vector<8x8xf32>
    %267 = tpu.concatenate %212, %230, %248, %266 in 1 : vector<8x8xf32>, vector<8x8xf32>, vector<8x8xf32>, vector<8x8xf32> -> vector<8x32xf32>
    %268 = vector.extract_strided_slice %181 {offsets = [0, 160], sizes = [32, 32], strides = [1, 1]} : vector<32x192xf32> to vector<32x32xf32>
    %cst_99 = arith.constant dense<0.000000e+00> : vector<8x32xf32>
    %269 = tpu.matmul %267, %268, %cst_99 {dimension_numbers = #tpu.dot_dimension_numbers<[1], [0], [0], [1], [0, 0, 1, 1], [], []>} : vector<8x32xf32>, vector<32x32xf32>, vector<8x32xf32> -> vector<8x32xf32>
    %270 = arith.addf %167, %269 : vector<8x32xf32>
    %271 = arith.mulf %270, %270 : vector<8x32xf32>
    %cst_100 = arith.constant dense<0.000000e+00> : vector<8xf32>
    %272 = vector.multi_reduction <add>, %271, %cst_100 [1] : vector<8x32xf32> to vector<8xf32>
    %273 = vector.shape_cast %272 : vector<8xf32> to vector<8x1xf32>
    %cst_101 = arith.constant 3.200000e+01 : f32
    %274 = vector.broadcast %cst_101 : f32 to vector<8x1xf32>
    %275 = arith.divf %273, %274 : vector<8x1xf32>
    %cst_102 = arith.constant 9.99999997E-7 : f32
    %276 = vector.broadcast %cst_102 : f32 to vector<8x1xf32>
    %277 = arith.addf %275, %276 : vector<8x1xf32>
    %278 = math.rsqrt %277 : vector<8x1xf32>
    %279 = vector.broadcast %278 : vector<8x1xf32> to vector<8x32xf32>
    %280 = arith.mulf %270, %279 : vector<8x32xf32>
    %281 = vector.broadcast %12 : vector<1x32xf32> to vector<8x32xf32>
    %282 = arith.mulf %280, %281 : vector<8x32xf32>
    %c1_103 = arith.constant 1 : index
    %c0_104 = arith.constant 0 : index
    %c0_105 = arith.constant 0 : index
    %283 = vector.load %arg5[%c1_103, %c0_104, %c0_105] : memref<2x32x256xf32, #tpu.memory_space<vmem>>, vector<1x32x256xf32>
    %284 = vector.shape_cast %283 : vector<1x32x256xf32> to vector<32x256xf32>
    %cst_106 = arith.constant dense<0.000000e+00> : vector<8x256xf32>
    %285 = tpu.matmul %282, %284, %cst_106 {dimension_numbers = #tpu.dot_dimension_numbers<[1], [0], [0], [1], [0, 0, 1, 1], [], []>} : vector<8x32xf32>, vector<32x256xf32>, vector<8x256xf32> -> vector<8x256xf32>
    %286 = vector.extract_strided_slice %285 {offsets = [0, 0], sizes = [8, 128], strides = [1, 1]} : vector<8x256xf32> to vector<8x128xf32>
    %287 = vector.extract_strided_slice %285 {offsets = [0, 128], sizes = [8, 128], strides = [1, 1]} : vector<8x256xf32> to vector<8x128xf32>
    %288 = arith.negf %286 : vector<8x128xf32>
    %289 = math.exp %288 : vector<8x128xf32>
    %cst_107 = arith.constant 1.000000e+00 : f32
    %290 = vector.broadcast %cst_107 : f32 to vector<8x128xf32>
    %291 = arith.addf %290, %289 : vector<8x128xf32>
    %292 = arith.divf %290, %291 : vector<8x128xf32>
    %293 = arith.mulf %286, %292 : vector<8x128xf32>
    %294 = arith.mulf %293, %287 : vector<8x128xf32>
    %c1_108 = arith.constant 1 : index
    %c0_109 = arith.constant 0 : index
    %c0_110 = arith.constant 0 : index
    %295 = vector.load %arg6[%c1_108, %c0_109, %c0_110] : memref<2x128x32xf32, #tpu.memory_space<vmem>>, vector<1x128x32xf32>
    %296 = vector.shape_cast %295 : vector<1x128x32xf32> to vector<128x32xf32>
    %cst_111 = arith.constant dense<0.000000e+00> : vector<8x32xf32>
    %297 = tpu.matmul %294, %296, %cst_111 {dimension_numbers = #tpu.dot_dimension_numbers<[1], [0], [0], [1], [0, 0, 1, 1], [], []>} : vector<8x128xf32>, vector<128x32xf32>, vector<8x32xf32> -> vector<8x32xf32>
    %298 = arith.addf %270, %297 : vector<8x32xf32>
    %299 = arith.mulf %298, %298 : vector<8x32xf32>
    %cst_112 = arith.constant dense<0.000000e+00> : vector<8xf32>
    %300 = vector.multi_reduction <add>, %299, %cst_112 [1] : vector<8x32xf32> to vector<8xf32>
    %301 = vector.shape_cast %300 : vector<8xf32> to vector<8x1xf32>
    %cst_113 = arith.constant 3.200000e+01 : f32
    %302 = vector.broadcast %cst_113 : f32 to vector<8x1xf32>
    %303 = arith.divf %301, %302 : vector<8x1xf32>
    %cst_114 = arith.constant 9.99999997E-7 : f32
    %304 = vector.broadcast %cst_114 : f32 to vector<8x1xf32>
    %305 = arith.addf %303, %304 : vector<8x1xf32>
    %306 = math.rsqrt %305 : vector<8x1xf32>
    %307 = vector.broadcast %306 : vector<8x1xf32> to vector<8x32xf32>
    %308 = arith.mulf %298, %307 : vector<8x32xf32>
    %309 = vector.broadcast %8 : vector<1x32xf32> to vector<8x32xf32>
    %310 = arith.mulf %308, %309 : vector<8x32xf32>
    %311 = tpu.concatenate %33, %310 in 1 : vector<8x32xf32>, vector<8x32xf32> -> vector<8x64xf32>
    %cst_115 = arith.constant dense<0.000000e+00> : vector<8x32xf32>
    %312 = tpu.matmul %311, %16, %cst_115 {dimension_numbers = #tpu.dot_dimension_numbers<[1], [0], [0], [1], [0, 0, 1, 1], [], []>} : vector<8x64xf32>, vector<64x32xf32>, vector<8x32xf32> -> vector<8x32xf32>
    %313 = vector.broadcast %7 : vector<1x32xf32> to vector<8x32xf32>
    %314 = arith.addf %312, %313 : vector<8x32xf32>
    %c0_116 = arith.constant 0 : index
    %c0_117 = arith.constant 0 : index
    %315 = vector.load %arg7[%c0_116, %c0_117] : memref<8x32xf32, #tpu.memory_space<vmem>>, vector<8x32xf32>
    tpu.vector_store %arg7[%c0_116, %c0_117], %314 {strides = array<i32>} : memref<8x32xf32, #tpu.memory_space<vmem>>, vector<8x32xf32>,
    return
  }
}

</mosaic_0001>

<bundles_post_ra>
// kernel: _mgllama_forward_jit.1
= control target key start
LH: loop header
LB: loop body
LE: loop exit
PB: predicated region body
PF: predicated region fallthrough
CT: control target
= control target key end

     0   :  { %v3366_v2 = vmov 0.0|0.0   ;;  %vm3367_vm0 = vmmov 0   ;;  %v3368_v4 = vmov 0.0   ;;  %s4036_s0 = inlined_call_operand.vmem [shape: f32[8,8], index: 0, kind: input, shape index: {}]   ;;  %s4037_s1 = inlined_call_operand.vmem [shape: f32[8,16], index: 1, kind: input, shape index: {}]   ;;  %s4038_s2 = inlined_call_operand.vmem [shape: f32[25,32], index: 2, kind: input, shape index: {}]   ;;  %s4039_s3 = inlined_call_operand.vmem [shape: f32[144,64], index: 3, kind: input, shape index: {}]   ;;  %s4040_s4 = inlined_call_operand.vmem [shape: f32[2,32,192], index: 4, kind: input, shape index: {}]   ;;  %s4041_s5 = inlined_call_operand.vmem [shape: f32[2,32,256], index: 5, kind: input, shape index: {}]   ;;  %s4042_s6 = inlined_call_operand.vmem [shape: f32[2,128,32], index: 6, kind: input, shape index: {}]   ;;  %s4043_s7 = inlined_call_operand.hbm [shape: f32[8,32], index: 7, kind: output, shape index: {}]  }
   0x1   :  { %v40_v0 = vld [vmem:[%s4039_s3] sm:$0xff]  ;;  %v41_v1 = vld [vmem:[%s4039_s3 + $0x8] sm:$0xff]  ;;  %3135 = vmatprep.subr.bf16.mxu1 %v3366_v2  ;;  %2909 = vmatprep.mubr.msk.f32.mxu1 %vm3367_vm0, %v3368_v4 }
   0x2   :  { %v3136_v3 = vpack.c.bf16 %v41_v1, %v40_v0 }
   0x3   :  { %12 = vsyncpa [#allocation3], 0  ;;  %2928 = vmatprep.subr.mxu0 %v3368_v4  ;;  %2930 = vmatprep.mubr.msk.f32.mxu0 %vm3367_vm0, %v3368_v4  ;;  %v28_v5 = vld [vmem:[%s4037_s1] sm:$0xff]  ;;  %vm58_vm1 = vcmask 130048   ;;  %v42_v6 = vld [vmem:[%s4039_s3 + $0x10] sm:$0xff]  ;;  %vm136_vm2 = vcmask 64512  }
   0x4   :  { %3137 = vmatpush3.bf16.msra.mxu1 %v3136_v3  ;;  %v43_v7 = vld [vmem:[%s4039_s3 + $0x18] sm:$0xff]  ;;  %v27_v8 = vld [vmem:[%s4036_s0] sm:$0xff]  ;;  %v45_v13 = vld [vmem:[%s4039_s3 + $0x28] sm:$0xff]  ;;  %vm210_vm3 = vcmask 261120   ;;  %s3369_s27 = smov 32   ;;  %s3370_s30 = smov 96  }
   0x5   :  { %2912 = vmatprep.subr.mxu1 %v3368_v4  ;;  %v3139_v9 = vpack.c.bf16 %v43_v7, %v42_v6  ;;  %v44_v12 = vld [vmem:[%s4039_s3 + $0x20] sm:$0xff]  ;;  %v2725_v15 = vld [vmem:[%s4038_s2 + $0x10] ss:$0 sm:$0xff]  ;;  %v47_v20 = vld [vmem:[%s4039_s3 + $0x38] sm:$0xff]  ;;  %s3371_s26 = smov 64   ;;  %s3372_s8 = smov 56  }
   0x6   :  { %v3142_v14 = vpack.c.bf16 %v45_v13, %v44_v12  ;;  %v46_v19 = vld [vmem:[%s4039_s3 + $0x30] sm:$0xff]  ;;  %v48_v24 = vld [vmem:[%s4039_s3 + $0x40] sm:$0xff]  ;;  %v49_v25 = vld [vmem:[%s4039_s3 + $0x48] sm:$0xff]  ;;  %s3373_s9 = smov 112   ;;  %s3374_s10 = smov 120   ;;  %vm1258_vm5 = vcmask 195584  }
   0x7   :  { %2910 = vmatmul.mubr.msk.f32.vlgmr.msra.gmra.mrb[0].mxu1 %vm58_vm1, %v28_v5  ;;  %v3145_v21 = vpack.c.bf16 %v47_v20, %v46_v19  ;;  %v3148_v26 = vpack.c.bf16 %v49_v25, %v48_v24  ;;  %v2728_v27 = vld [vmem:[%s4038_s2 + $0x11] ss:$0 sm:$0xff]  ;;  %v2731_v33 = vld [vmem:[%s4038_s2 + $0x12] ss:$0 sm:$0xff]  ;;  %v3504_v44 = vld [vmem:[%s4040_s4 + $0x8] sm:$0xff]  ;;  %s3375_s11 = smov 48  }
   0x8   :  { %2914 = vmatprep.mubr.msk.f32.mxu1 %vm3367_vm0, %v3368_v4  ;;  %v3509_v45 = vld [vmem:[%s4040_s4 + $0x18] sm:$0xff]  ;;  %v471_v47 = vld [vmem:[%s4040_s4] sm:$0xff]  ;;  %v473_v48 = vld [vmem:[%s4040_s4 + $0x10] sm:$0xff]  ;;  %s3376_s12 = smov 40   ;;  %s3377_s1 = smov 104   ;;  %vm2635_vm6 = vcmask 523264  }
   0x9   :  { %v3150_v46 = vpack.c.bf16 %v3509_v45, %v3504_v44  ;;  %v3152_v49 = vpack.c.bf16 %v473_v48, %v471_v47  ;;  %v3522_v50 = vld [vmem:[%s4040_s4 + $0x28] sm:$0xff]  ;;  %v3527_v51 = vld [vmem:[%s4040_s4 + $0x38] sm:$0xff]  ;;  %v475_v53 = vld [vmem:[%s4040_s4 + $0x20] sm:$0xff]  ;;  %s3378_s13 = smov 8   ;;  %s3379_s0 = smov 16  }
   0xa   :  { %v3154_v52 = vpack.c.bf16 %v3527_v51, %v3522_v50  ;;  %v477_v54 = vld [vmem:[%s4040_s4 + $0x30] sm:$0xff]  ;;  %v30_v56 = vld [vmem:[%s4038_s2 + $0x8] sm:$0xff]  ;;  %v3546_v57 = vld [vmem:[%s4038_s2] sm:$0xff]  ;;  %s3380_s14 = smov 24   ;;  %s3381_s22 = smov [#allocation2]  }
   0xb   :  { %v3156_v55 = vpack.c.bf16 %v477_v54, %v475_v53  ;;  %v2732_v62 = vld [vmem:[%s4038_s2 + $0x15] ss:$0 sm:$0xff]  ;;  %s2716_s23 = sshll.u32 %s3381_s22, 4  ;;  %s2717_s23 = int_to_ptr.vmem [resolvable:$true] %s2716_s23 }
   0xc   :  { %p3347_p1 = scmp.lt.s32.totalorder %s2717_s23, %s2717_s23 }
  0xda   :  { %v128_v10 = vpop.f32.mrb[0].mxu1 }
  0xdb   :  { %v2911_v11 = vpop.f32.mrb[1].mxu1  ;;  %2913 = vmatpush3.msra.mxu1 %v128_v10 }
  0xdc   :  { %2915 = vmatmul.mubr.msk.f32.vlgmr.msra.gmra.mrb[2].mxu1 %vm136_vm2, %v27_v8  ;;  %3138 = vmatprep.subr.bf16.mxu1 %v3366_v2 }
  0xdd   :  { %3140 = vmatpush3.bf16.msra.mxu1 %v3139_v9  ;;  %2925 = vmatprep.mubr.msk.f32.mxu1 %vm3367_vm0, %v3368_v4 }
  0xde   :  { %3141 = vmatprep.subr.bf16.mxu1 %v3366_v2 }
  0xe1   :  { %3143 = vmatpush3.bf16.msra.mxu1 %v3142_v14 }
  0xe2   :  { %3151 = vmatprep.subr.bf16.mxu1 %v3150_v46 }
 0x1af   :  { %v206_v16 = vpop.f32.mrb[2].mxu1 }
 0x1b0   :  { %v207_v17 = vadd.f32 %v2725_v15, %v206_v16  ;;  %v2916_v18 = vpop.f32.mrb[3].mxu1 }
 0x1b2   :  { %2926 = vmatmul.mubr.msk.f32.vlgmr.msra.gmra.mrb[4].mxu1 %vm210_vm3, %v207_v17 }
 0x1b3   :  { %546 = vmatprep.mubr.f32.mxu1 %v3368_v4  ;;  %3153 = vmatpush1.bf16.msra.mxu1 %v3152_v49 }
 0x1b4   :  { %3155 = vmatprep.subr.bf16.mxu1 %v3154_v52 }
 0x1b7   :  { %3157 = vmatpush1.bf16.msra.mxu1 %v3156_v55 }
 0x1b8   :  { %2949 = vmatprep.subr.mxu1 %v3368_v4 }
 0x285   :  { %v280_v22 = vpop.f32.mrb[4].mxu1 }
 0x286   :  { %2929 = vmatpush3.msra.mxu0 %v280_v22  ;;  %v2927_v23 = vpop.f32.mrb[5].mxu1 }
 0x287   :  { %2931 = vmatmul.mubr.msk.f32.vlgmr.msra.gmra.mrb[0].mxu0 %vm136_vm2, %v27_v8  ;;  %3144 = vmatprep.subr.bf16.mxu0 %v3366_v2  ;;  %v452_v23 = vlaneseq }
 0x288   :  { %3146 = vmatpush3.bf16.msra.mxu0 %v3145_v21  ;;  %2941 = vmatprep.mubr.msk.f32.mxu0 %vm3367_vm0, %v3368_v4 }
 0x289   :  { %3147 = vmatprep.subr.bf16.mxu0 %v3366_v2  ;;  %v453_v24 = vshrl.u32 %v452_v23, 7  ;;  %v455_v25 = vand.u32 127, %v452_v23 }
 0x28b   :  { %vm3600_vm4 = vcmp.le.s32.totalorder %v455_v25, %v453_v24 }
 0x28c   :  { %3149 = vmatpush3.bf16.msra.mxu0 %v3148_v26 }
 0x28d   :  { %2944 = vmatprep.subr.mxu0 %v3368_v4 }
 0x35a   :  { %v354_v28 = vpop.f32.mrb[0].mxu0 }
 0x35b   :  { %v355_v29 = vadd.f32 %v2728_v27, %v354_v28  ;;  %v2932_v30 = vpop.f32.mrb[1].mxu0 }
 0x35d   :  { %2942 = vmatmul.mubr.msk.f32.vlgmr.msra.gmra.mrb[2].mxu0 %vm210_vm3, %v355_v29 }
 0x35e   :  { %2946 = vmatprep.mubr.msk.f32.mxu0 %vm3367_vm0, %v3368_v4 }
 0x430   :  { %v427_v31 = vpop.f32.mrb[2].mxu0 }
 0x431   :  { %432 = vrot.lane.b32.xlu0 %v427_v31, %s3369_s27  ;;  %v2943_v32 = vpop.f32.mrb[3].mxu0 }
 0x435   :  { %441 = vrot.lane.b32.xlu0 %v2731_v33, %s3369_s27 }
 0x439   :  { %569 = vrot.lane.b32.xlu0 %v30_v56, %s3370_s30 }
 0x43d   :  { %555 = vrot.lane.b32.xlu0 %v30_v56, %s3369_s27 }
 0x441   :  { %565 = vrot.lane.b32.xlu0 %v3546_v57, %s3371_s26 }
 0x4a3   :  { %v433_v34 = vpop.permute.xlu0 %432 }
 0x4a4   :  { %v435_v35 = vadd.f32 %v433_v34, %v280_v22 }
 0x4a7   :  { %v442_v36 = vpop.permute.xlu0 %441 }
 0x4a8   :  { %v444_v37 = vadd.f32 %v442_v36, %v435_v35 }
 0x4aa   :  { %3290 = vtanh.f32 %v444_v37 }
 0x4ab   :  { %v3557_v1 = vpop.permute.xlu0 %569 }
 0x4af   :  { %v3565_v7 = vpop.permute.xlu0 %555 }
 0x4b3   :  { %v3569_v9 = vpop.permute.xlu0 %565 }
 0x4b4   :  { %v3291_v38 = vpop.eup %3290 }
 0x4b5   :  { %447 = vrot.lane.b32.xlu1 %v3291_v38, %s3370_s30 }
 0x527   :  { %v448_v39 = vpop.permute.xlu1 %447 }
 0x528   :  { %v450_v40 = vadd.f32 %v448_v39, %v207_v17 }
 0x52a   :  { %v3496_v41 = vsub.f32 %v450_v40, %v355_v29 }
 0x52c   :  { %v457_v42 = vmul.f32 %v3496_v41, %v3496_v41 }
 0x52e   :  { %v458_v43 = vsel %vm210_vm3, %v457_v42, 0.0 }
 0x52f   :  { %459 = vadd.xlane.f32.xlu1 %v458_v43 }
 0x5bc   :  { %v460_v58 = vpop.xlane.xlu1 %459 }
 0x5bd   :  { %v462_v59 = vmul.f32 0.03125, %v460_v58 }
 0x5bf   :  { %v463_v60 = vadd.f32 1e-06, %v462_v59 }
 0x5c1   :  { %3292 = vrsqrt.f32 %v463_v60 }
 0x5cb   :  { %v3293_v61 = vpop.eup %3292 }
 0x5cc   :  { %v465_v63 = vmul.f32 %v3293_v61, %v3496_v41 }
 0x5ce   :  { %v470_v0 = vmul.f32 %v2732_v62, %v465_v63 }
 0x5d0   :  { %2733 = vmatmul.mubr.msk.f32.vlgmr.msra.gmra.mrb[6].mxu1 %vm210_vm3, %v470_v0 }
 0x5d1   :  { %2951 = vmatprep.mubr.msk.f32.mxu1 %vm3367_vm0, %v3368_v4 }
 0x6a3   :  { %v548_v3 = vpop.f32.mrb[6].mxu1 }
 0x6a4   :  { %v3559_v5 = vpop.f32.mrb[7].mxu1  ;;  %v572_v6 = vmul.f32 %v3557_v1, %v548_v3  ;;  %v558_v8 = vmul.f32 %v3565_v7, %v548_v3  ;;  %v568_v10 = vmul.f32 %v3569_v9, %v548_v3  ;;  %v553_v13 = vmul.f32 %v548_v3, %v3546_v57 }
 0x6a5   :  { %2950 = vmatpush3.msra.mxu1 %v3559_v5 }
 0x6a6   :  { %574 = vrot.lane.b32.xlu0 %v572_v6, %s3370_s30  ;;  %2959 = vmatprep.subr.mxu1 %v3368_v4 }
 0x6aa   :  { %560 = vrot.lane.b32.xlu0 %v558_v8, %s3370_s30 }
 0x718   :  { %v575_v11 = vpop.permute.xlu0 %574 }
 0x719   :  { %v577_v12 = vadd.f32 %v575_v11, %v568_v10 }
 0x71b   :  { %579 = vrot.lane.b32.xlu0 %v577_v12, %s3371_s26 }
 0x71c   :  { %v561_v14 = vpop.permute.xlu0 %560 }
 0x71d   :  { %v563_v15 = vadd.f32 %v561_v14, %v553_v13 }
 0x71f   :  { %744 = vrot.lane.b32.xlu0 %v577_v12, %s3372_s8  ;;  %910 = vrot.lane.b32.xlu1 %v563_v15, %s3373_s9 }
 0x723   :  { %742 = vrot.lane.b32.xlu0 %v563_v15, %s3374_s10 }
 0x727   :  { %912 = vrot.lane.b32.xlu0 %v577_v12, %s3375_s11 }
 0x72b   :  { %1079 = vrot.lane.b32.xlu0 %v577_v12, %s3376_s12 }
 0x72f   :  { %1077 = vrot.lane.b32.xlu0 %v563_v15, %s3377_s1 }
 0x78d   :  { %v580_v16 = vpop.permute.xlu0 %579 }
 0x78e   :  { %2945 = vmatpush3.xpose.msk.msra.mxu0 %vm136_vm2, %v580_v16 }
 0x78f   :  { %2954 = vmatprep.subr.mxu0 %v3368_v4 }
 0x791   :  { %v745_v17 = vpop.permute.xlu0 %744  ;;  %2947 = vmatmul.mubr.msk.f32.vlgmr.msra.gmra.mrb[4].mxu0 %vm136_vm2, %v563_v15  ;;  %v911_v20 = vpop.permute.xlu1 %910 }
 0x792   :  { %2955 = vmatpush3.xpose.msk.msra.mxu0 %vm136_vm2, %v745_v17  ;;  %2956 = vmatprep.mubr.msk.f32.mxu0 %vm3367_vm0, %v3368_v4 }
 0x793   :  { %2964 = vmatprep.subr.mxu0 %v3368_v4 }
 0x795   :  { %v743_v18 = vpop.permute.xlu0 %742 }
 0x796   :  { %2957 = vmatmul.mubr.msk.f32.vlgmr.msra.gmra.mrb[6].mxu0 %vm136_vm2, %v743_v18 }
 0x797   :  { %2966 = vmatprep.mubr.msk.f32.mxu0 %vm3367_vm0, %v3368_v4 }
 0x799   :  { %v913_v19 = vpop.permute.xlu0 %912 }
 0x79a   :  { %2965 = vmatpush3.xpose.msk.msra.mxu0 %vm136_vm2, %v913_v19 }
 0x79b   :  { %2974 = vmatprep.subr.mxu0 %v3368_v4 }
 0x79d   :  { %v1080_v21 = vpop.permute.xlu0 %1079  ;;  %2967 = vmatmul.mubr.msk.f32.vlgmr.msra.gmra.mrb[8].mxu0 %vm136_vm2, %v911_v20 }
 0x79e   :  { %2975 = vmatpush3.xpose.msk.msra.mxu0 %vm136_vm2, %v1080_v21  ;;  %2976 = vmatprep.mubr.msk.f32.mxu0 %vm3367_vm0, %v3368_v4 }
 0x79f   :  { %3158 = vmatprep.subr.bf16.mxu0 %v3366_v2 }
 0x7a1   :  { %v1078_v22 = vpop.permute.xlu0 %1077 }
 0x7a2   :  { %2977 = vmatmul.mubr.msk.f32.vlgmr.msra.gmra.mrb[10].mxu0 %vm136_vm2, %v1078_v22 }
 0x7a3   :  { %2992 = vmatprep.mubr.msk.f32.mxu0 %vm3367_vm0, %v3368_v4 }
 0x864   :  { %v652_v26 = vpop.f32.mrb[4].mxu0 }
 0x865   :  { %v656_v28 = vmul.f32 0.35355338, %v652_v26  ;;  %v2948_v29 = vpop.f32.mrb[5].mxu0 }
 0x867   :  { %v657_v30 = vsel %vm3600_vm4, %v656_v28, -1e+30 }
 0x868   :  { %v658_v31 = vsel %vm136_vm2, %v657_v30, -inf }
 0x869   :  { %659 = vmax.xlane.f32.xlu0 %v658_v31  ;;  %v816_v32 = vpop.f32.mrb[6].mxu0  ;;  %v3275_v31 = vpack.i.bf16 %v3527_v51, %v3522_v50 }
 0x86a   :  { %v820_v33 = vmul.f32 0.35355338, %v816_v32  ;;  %v2958_v34 = vpop.f32.mrb[7].mxu0 }
 0x86c   :  { %v821_v35 = vsel %vm3600_vm4, %v820_v33, -1e+30 }
 0x86d   :  { %v822_v36 = vsel %vm136_vm2, %v821_v35, -inf }
 0x86e   :  { %823 = vmax.xlane.f32.xlu1 %v822_v36 }
 0x870   :  { %v984_v37 = vpop.f32.mrb[8].mxu0 }
 0x871   :  { %v988_v38 = vmul.f32 0.35355338, %v984_v37  ;;  %v2968_v39 = vpop.f32.mrb[9].mxu0 }
 0x873   :  { %v989_v40 = vsel %vm3600_vm4, %v988_v38, -1e+30 }
 0x874   :  { %v990_v42 = vsel %vm136_vm2, %v989_v40, -inf }
 0x875   :  { %991 = vmax.xlane.f32.xlu0 %v990_v42  ;;  %v1151_v43 = vpop.f32.mrb[10].mxu0 }
 0x876   :  { %v1155_v46 = vmul.f32 0.35355338, %v1151_v43  ;;  %v2978_v47 = vpop.f32.mrb[11].mxu0 }
 0x878   :  { %v1156_v48 = vsel %vm3600_vm4, %v1155_v46, -1e+30 }
 0x879   :  { %v1157_v49 = vsel %vm136_vm2, %v1156_v48, -inf }
 0x87a   :  { %1158 = vmax.xlane.f32.xlu0 %v1157_v49 }
 0x8f6   :  { %v660_v52 = vpop.xlane.xlu0 %659 }
 0x8f7   :  { %v661_v53 = vsub.f32 %v657_v30, %v660_v52  ;;  %v3270_v30 = vpack.i.bf16 %v3509_v45, %v3504_v44 }
 0x8f9   :  { %v662_v54 = vmul.f32 1.442695, %v661_v53 }
 0x8fb   :  { %3294 = vpow2.f32 %v662_v54  ;;  %v824_v55 = vpop.xlane.xlu1 %823 }
 0x8fc   :  { %v825_v56 = vsub.f32 %v821_v35, %v824_v55 }
 0x8fe   :  { %v826_v58 = vmul.f32 1.442695, %v825_v56 }
 0x900   :  { %3296 = vpow2.f32 %v826_v58 }
 0x902   :  { %v992_v59 = vpop.xlane.xlu0 %991 }
 0x903   :  { %v993_v60 = vsub.f32 %v989_v40, %v992_v59 }
 0x905   :  { %v3295_v61 = vpop.eup %3294  ;;  %v994_v62 = vmul.f32 1.442695, %v993_v60 }
 0x906   :  { %v664_v63 = vsel %vm136_vm2, %v3295_v61, 0.0 }
 0x907   :  { %3298 = vpow2.f32 %v994_v62  ;;  %665 = vadd.xlane.f32.xlu0 %v664_v63  ;;  %v1159_v10 = vpop.xlane.xlu0 %1158  ;;  %v1366_v62 = vld [vmem:[%s4041_s5 + $0x18] sm:$0xff] }
 0x908   :  { %v1160_v11 = vsub.f32 %v1156_v48, %v1159_v10  ;;  %v1370_v10 = vld [vmem:[%s4041_s5 + $0x38] sm:$0xff] }
 0x90a   :  { %v3297_v0 = vpop.eup %3296  ;;  %v1161_v12 = vmul.f32 1.442695, %v1160_v11 }
 0x90b   :  { %v828_v3 = vsel %vm136_vm2, %v3297_v0, 0.0 }
 0x90c   :  { %829 = vadd.xlane.f32.xlu1 %v828_v3  ;;  %3300 = vpow2.f32 %v1161_v12  ;;  %v1365_v3 = vld [vmem:[%s4041_s5 + $0x10] sm:$0xff]  ;;  %v1367_v12 = vld [vmem:[%s4041_s5 + $0x20] sm:$0xff] }
 0x911   :  { %v3299_v6 = vpop.eup %3298 }
 0x912   :  { %v996_v8 = vsel %vm136_vm2, %v3299_v6, 0.0 }
 0x913   :  { %997 = vadd.xlane.f32.xlu0 %v996_v8  ;;  %v1368_v8 = vld [vmem:[%s4041_s5 + $0x28] sm:$0xff] }
 0x914   :  { %v3168_v11 = vpack.c.bf16 %v1370_v10, %v1368_v8  ;;  %v3777_v8 = vld [vmem:[%s4040_s4 + $0x68] sm:$0xff]  ;;  %v3782_v10 = vld [vmem:[%s4040_s4 + $0x78] sm:$0xff] }
 0x916   :  { %v3301_v13 = vpop.eup %3300 }
 0x917   :  { %v1163_v14 = vsel %vm136_vm2, %v3301_v13, 0.0 }
 0x91d   :  { %1001 = vrot.lane.b32.xlu1 %v3559_v5, %s3373_s9 }
 0x929   :  { %834 = vrot.lane.b32.xlu0 %v3559_v5, %s3374_s10 }
 0x92d   :  { %3271 = vrot.lane.b32.xlu0 %v3270_v30, %s3370_s30 }
 0x941   :  { %1164 = vadd.xlane.f32.xlu1 %v1163_v14 }
 0x952   :  { %1168 = vrot.lane.b32.xlu1 %v3559_v5, %s3377_s1 }
 0x956   :  { %3276 = vrot.lane.b32.xlu1 %v3275_v31, %s3370_s30  ;;  %v1459_v31 = vld [vmem:[%s4042_s6 + $0x30] sm:$0xff] }
 0x994   :  { %v666_v15 = vpop.xlane.xlu0 %665 }
 0x995   :  { %3302 = vrcp.f32 %v666_v15 }
 0x999   :  { %v830_v16 = vpop.xlane.xlu1 %829 }
 0x99a   :  { %3304 = vrcp.f32 %v830_v16 }
 0x99d   :  { %v1002_v5 = vpop.permute.xlu1 %1001 }
 0x99f   :  { %v3303_v17 = vpop.eup %3302 }
 0x9a0   :  { %v668_v18 = vmul.f32 %v3303_v17, %v3295_v61  ;;  %v998_v19 = vpop.xlane.xlu0 %997  ;;  %v1364_v61 = vld [vmem:[%s4041_s5 + $0x8] sm:$0xff] }
 0x9a1   :  { %3306 = vrcp.f32 %v998_v19  ;;  %v3164_v63 = vpack.c.bf16 %v1366_v62, %v1364_v61  ;;  %v2747_v19 = vld [vmem:[%s4038_s2 + $0x17] ss:$0 sm:$0xff]  ;;  %v3759_v62 = vld [vmem:[%s4040_s4 + $0x48] sm:$0xff] }
 0x9a2   :  { %2952 = vmatmul.mubr.msk.f32.vlgmr.msra.gmra.mrb[8].mxu1 %vm136_vm2, %v668_v18 }
 0x9a3   :  { %2961 = vmatprep.mubr.msk.f32.mxu1 %vm3367_vm0, %v3368_v4 }
 0x9a4   :  { %v3305_v20 = vpop.eup %3304  ;;  %v835_v21 = vpop.permute.xlu0 %834 }
 0x9a5   :  { %v832_v22 = vmul.f32 %v3305_v20, %v3297_v0  ;;  %2960 = vmatpush3.msra.mxu1 %v835_v21  ;;  %v1363_v0 = vld [vmem:[%s4041_s5] sm:$0xff] }
 0x9a6   :  { %2969 = vmatprep.subr.mxu1 %v3368_v4 }
 0x9a7   :  { %2962 = vmatmul.mubr.msk.f32.vlgmr.msra.gmra.mrb[10].mxu1 %vm136_vm2, %v832_v22  ;;  %v1453_v22 = vld [vmem:[%s4042_s6] sm:$0xff] }
 0x9a8   :  { %2970 = vmatpush3.msra.mxu1 %v1002_v5  ;;  %2971 = vmatprep.mubr.msk.f32.mxu1 %vm3367_vm0, %v3368_v4  ;;  %v3272_v32 = vpop.permute.xlu0 %3271  ;;  %v1454_v5 = vld [vmem:[%s4042_s6 + $0x8] sm:$0xff] }
 0x9a9   :  { %2979 = vmatprep.subr.mxu1 %v3368_v4  ;;  %v3274_v33 = vunpack.i.h.bf16 %v3272_v32  ;;  %v3273_v34 = vunpack.i.l.bf16 %v3272_v32  ;;  %v1460_v32 = vld [vmem:[%s4042_s6 + $0x38] sm:$0xff] }
 0x9ab   :  { %v3307_v23 = vpop.eup %3306  ;;  %v3159_v35 = vpack.c.bf16 %v3274_v33, %v3273_v34  ;;  %v3182_v33 = vpack.c.bf16 %v1460_v32, %v1459_v31  ;;  %v1461_v34 = vld [vmem:[%s4042_s6 + $0x40] sm:$0xff] }
 0x9ac   :  { %v1000_v24 = vmul.f32 %v3307_v23, %v3299_v6  ;;  %v3166_v6 = vpack.c.bf16 %v1365_v3, %v1363_v0  ;;  %v3173_v23 = vpack.c.bf16 %v1454_v5, %v1453_v22  ;;  %v2751_v0 = vld [vmem:[%s4040_s4 + $0x40] sm:$0xff]  ;;  %v2753_v3 = vld [vmem:[%s4040_s4 + $0x50] sm:$0xff] }
 0x9ad   :  { %3160 = vmatpush3.bf16.msra.mxu0 %v3159_v35  ;;  %v1462_v35 = vld [vmem:[%s4042_s6 + $0x48] sm:$0xff] }
 0x9ae   :  { %2972 = vmatmul.mubr.msk.f32.vlgmr.msra.gmra.mrb[12].mxu1 %vm136_vm2, %v1000_v24  ;;  %3161 = vmatprep.subr.bf16.mxu0 %v3366_v2  ;;  %v1455_v24 = vld [vmem:[%s4042_s6 + $0x10] sm:$0xff] }
 0x9af   :  { %2981 = vmatprep.mubr.msk.f32.mxu1 %vm3367_vm0, %v3368_v4 }
 0x9ce   :  { %v1165_v25 = vpop.xlane.xlu1 %1164 }
 0x9cf   :  { %3308 = vrcp.f32 %v1165_v25  ;;  %v1456_v25 = vld [vmem:[%s4042_s6 + $0x18] sm:$0xff] }
 0x9d2   :  { %v1169_v26 = vpop.permute.xlu1 %1168 }
 0x9d3   :  { %2980 = vmatpush3.msra.mxu1 %v1169_v26  ;;  %v3176_v26 = vpack.c.bf16 %v1456_v25, %v1455_v24 }
 0x9d4   :  { %3165 = vmatprep.subr.bf16.mxu1 %v3164_v63  ;;  %v3764_v63 = vld [vmem:[%s4040_s4 + $0x58] sm:$0xff] }
 0x9d5   :  { %v3280_v27 = vpack.i.bf16 %v3764_v63, %v3759_v62 }
 0x9d6   :  { %v3277_v36 = vpop.permute.xlu1 %3276 }
 0x9d7   :  { %v3279_v37 = vunpack.i.h.bf16 %v3277_v36  ;;  %v3278_v38 = vunpack.i.l.bf16 %v3277_v36  ;;  %v3185_v36 = vpack.c.bf16 %v1462_v35, %v1461_v34 }
 0x9d9   :  { %v3309_v28 = vpop.eup %3308  ;;  %v3162_v39 = vpack.c.bf16 %v3279_v37, %v3278_v38  ;;  %v1463_v37 = vld [vmem:[%s4042_s6 + $0x50] sm:$0xff]  ;;  %v1464_v38 = vld [vmem:[%s4042_s6 + $0x58] sm:$0xff] }
 0x9da   :  { %v1167_v29 = vmul.f32 %v3309_v28, %v3301_v13  ;;  %v1369_v13 = vld [vmem:[%s4041_s5 + $0x30] sm:$0xff]  ;;  %v1457_v28 = vld [vmem:[%s4042_s6 + $0x20] sm:$0xff] }
 0x9db   :  { %3163 = vmatpush3.bf16.msra.mxu0 %v3162_v39  ;;  %v3170_v14 = vpack.c.bf16 %v1369_v13, %v1367_v12  ;;  %v3188_v39 = vpack.c.bf16 %v1464_v38, %v1463_v37  ;;  %v2755_v12 = vld [vmem:[%s4040_s4 + $0x60] sm:$0xff]  ;;  %v2757_v13 = vld [vmem:[%s4040_s4 + $0x70] sm:$0xff] }
 0x9dc   :  { %2982 = vmatmul.mubr.msk.f32.vlgmr.msra.gmra.mrb[14].mxu1 %vm136_vm2, %v1167_v29  ;;  %3172 = vmatprep.subr.bf16.mxu0 %v3366_v2  ;;  %v1458_v29 = vld [vmem:[%s4042_s6 + $0x28] sm:$0xff] }
 0x9dd   :  { %1438 = vmatprep.mubr.f32.mxu1 %v3368_v4  ;;  %3167 = vmatpush1.bf16.msra.mxu1 %v3166_v6  ;;  %v3179_v30 = vpack.c.bf16 %v1458_v29, %v1457_v28  ;;  %v3198_v6 = vpack.c.bf16 %v2753_v3, %v2751_v0 }
 0x9de   :  { %3169 = vmatprep.subr.bf16.mxu1 %v3168_v11  ;;  %v3200_v11 = vpack.c.bf16 %v3782_v10, %v3777_v8 }
 0x9e1   :  { %3171 = vmatpush1.bf16.msra.mxu1 %v3170_v14  ;;  %v3202_v14 = vpack.c.bf16 %v2757_v13, %v2755_v12 }
 0xa75   :  { %v738_v44 = vpop.f32.mrb[8].mxu1 }
 0xa76   :  { %v2953_v45 = vpop.f32.mrb[9].mxu1 }
 0xa77   :  { %v1466_v45 = vld [vmem:[%s4042_s6 + $0x68] sm:$0xff] }
 0xa7a   :  { %v906_v40 = vpop.f32.mrb[10].mxu1 }
 0xa7b   :  { %1245 = vrot.lane.b32.xlu0 %v906_v40, %s3378_s13  ;;  %v2963_v50 = vpop.f32.mrb[11].mxu1 }
 0xa7c   :  { %v1467_v50 = vld [vmem:[%s4042_s6 + $0x70] sm:$0xff] }
 0xa81   :  { %v1073_v51 = vpop.f32.mrb[12].mxu1 }
 0xa82   :  { %1249 = vrot.lane.b32.xlu1 %v1073_v51, %s3379_s0  ;;  %v2973_v42 = vpop.f32.mrb[13].mxu1  ;;  %v1468_v51 = vld [vmem:[%s4042_s6 + $0x78] sm:$0xff] }
 0xa83   :  { %v3194_v42 = vpack.c.bf16 %v1468_v51, %v1467_v50 }
 0xaaf   :  { %v1240_v43 = vpop.f32.mrb[14].mxu1 }
 0xab0   :  { %1253 = vrot.lane.b32.xlu0 %v1240_v43, %s3380_s14  ;;  %v2983_v46 = vpop.f32.mrb[15].mxu1 }
 0xaed   :  { %v1246_v47 = vpop.permute.xlu0 %1245 }
 0xaee   :  { %v1256_v49 = vsel %vm136_vm2, %v738_v44, %v1246_v47  ;;  %v1465_v44 = vld [vmem:[%s4042_s6 + $0x60] sm:$0xff] }
 0xaef   :  { %v3191_v40 = vpack.c.bf16 %v1466_v45, %v1465_v44 }
 0xaf4   :  { %v1250_v48 = vpop.permute.xlu1 %1249 }
 0xaf5   :  { %v1257_v52 = vsel %vm58_vm1, %v1256_v49, %v1250_v48 }
 0xb22   :  { %v1254_v53 = vpop.permute.xlu0 %1253 }
 0xb23   :  { %v1259_v54 = vsel %vm1258_vm5, %v1257_v52, %v1254_v53 }
 0xb24   :  { %2993 = vmatmul.mubr.msk.f32.vlgmr.msra.gmra.mrb[12].mxu0 %vm210_vm3, %v1259_v54 }
 0xb25   :  { %3027 = vmatprep.mubr.msk.f32.mxu0 %vm3367_vm0, %v3368_v4  ;;  %3174 = vmatpush3.bf16.msra.mxu0 %v3173_v23 }
 0xb26   :  { %3175 = vmatprep.subr.bf16.mxu0 %v3366_v2 }
 0xb29   :  { %3177 = vmatpush3.bf16.msra.mxu0 %v3176_v26 }
 0xb2a   :  { %3178 = vmatprep.subr.bf16.mxu0 %v3366_v2 }
 0xb2d   :  { %3180 = vmatpush3.bf16.msra.mxu0 %v3179_v30 }
 0xb2e   :  { %3181 = vmatprep.subr.bf16.mxu0 %v3366_v2 }
 0xb31   :  { %3183 = vmatpush3.bf16.msra.mxu0 %v3182_v33 }
 0xb32   :  { %3184 = vmatprep.subr.bf16.mxu0 %v3366_v2 }
 0xb35   :  { %3186 = vmatpush3.bf16.msra.mxu0 %v3185_v36 }
 0xb36   :  { %3187 = vmatprep.subr.bf16.mxu0 %v3366_v2 }
 0xb39   :  { %3189 = vmatpush3.bf16.msra.mxu0 %v3188_v39 }
 0xb3a   :  { %3190 = vmatprep.subr.bf16.mxu0 %v3366_v2 }
 0xb3d   :  { %3192 = vmatpush3.bf16.msra.mxu0 %v3191_v40 }
 0xb3e   :  { %3193 = vmatprep.subr.bf16.mxu0 %v3366_v2 }
 0xb41   :  { %3195 = vmatpush3.bf16.msra.mxu0 %v3194_v42 }
 0xb42   :  { %3060 = vmatprep.subr.mxu0 %v3368_v4 }
 0xbf7   :  { %v1345_v55 = vpop.f32.mrb[12].mxu0 }
 0xbf8   :  { %v3657_v56 = vadd.f32 %v1345_v55, %v3496_v41  ;;  %v2994_v58 = vpop.f32.mrb[13].mxu0 }
 0xbfa   :  { %v1350_v59 = vmul.f32 %v3657_v56, %v3657_v56 }
 0xbfc   :  { %v1351_v60 = vsel %vm210_vm3, %v1350_v59, 0.0 }
 0xbfd   :  { %1352 = vadd.xlane.f32.xlu1 %v1351_v60 }
 0xc8a   :  { %v1353_v15 = vpop.xlane.xlu1 %1352 }
 0xc8b   :  { %v1354_v16 = vmul.f32 0.03125, %v1353_v15 }
 0xc8d   :  { %v1355_v17 = vadd.f32 1e-06, %v1354_v16 }
 0xc8f   :  { %3310 = vrsqrt.f32 %v1355_v17 }
 0xc99   :  { %v3311_v18 = vpop.eup %3310 }
 0xc9a   :  { %v1357_v20 = vmul.f32 %v3311_v18, %v3657_v56 }
 0xc9c   :  { %v1362_v21 = vmul.f32 %v2747_v19, %v1357_v20  ;;  %v2750_v19 = vld [vmem:[%s4038_s2 + $0x16] ss:$0 sm:$0xff] }
 0xc9e   :  { %2748 = vmatmul.mubr.msk.f32.vlgmr.msra.gmra.mrb[16].mxu1 %vm210_vm3, %v1362_v21 }
 0xc9f   :  { %1629 = vmatprep.mubr.f32.mxu1 %v3368_v4 }
 0xd71   :  { %v1440_v43 = vpop.f32.mrb[16].mxu1 }
 0xd72   :  { %v2749_v46 = vmul.f32 -1.442695, %v1440_v43  ;;  %v1442_v47 = vpop.f32.mrb[17].mxu1 }
 0xd74   :  { %3312 = vpow2.f32 %v2749_v46 }
 0xd7e   :  { %v3313_v48 = vpop.eup %3312 }
 0xd7f   :  { %v1448_v49 = vadd.f32 1.0, %v3313_v48 }
 0xd81   :  { %3314 = vrcp.f32 %v1448_v49 }
 0xd8b   :  { %v3315_v52 = vpop.eup %3314 }
 0xd8c   :  { %v1451_v53 = vmul.f32 %v3315_v52, %v1440_v43 }
 0xd8e   :  { %v1452_v54 = vmul.f32 %v1451_v53, %v1442_v47 }
 0xd90   :  { %3028 = vmatmul.mubr.f32.vlgmr.msra.gmra.mrb[14].mxu0 %v1452_v54 }
 0xd91   :  { %3062 = vmatprep.mubr.msk.f32.mxu0 %vm3367_vm0, %v3368_v4 }
 0xe63   :  { %v1535_v55 = vpop.f32.mrb[14].mxu0 }
 0xe64   :  { %v3751_v58 = vadd.f32 %v1535_v55, %v3657_v56  ;;  %v3029_v59 = vpop.f32.mrb[15].mxu0  ;;  %v3196_v56 = vpack.c.bf16 %v3764_v63, %v3759_v62 }
 0xe66   :  { %v1540_v60 = vmul.f32 %v3751_v58, %v3751_v58  ;;  %3197 = vmatprep.subr.bf16.mxu1 %v3196_v56 }
 0xe67   :  { %3199 = vmatpush1.bf16.msra.mxu1 %v3198_v6 }
 0xe68   :  { %v1541_v61 = vsel %vm210_vm3, %v1540_v60, 0.0  ;;  %3201 = vmatprep.subr.bf16.mxu1 %v3200_v11 }
 0xe69   :  { %1542 = vadd.xlane.f32.xlu0 %v1541_v61 }
 0xe6b   :  { %3203 = vmatpush1.bf16.msra.mxu1 %v3202_v14 }
 0xe6c   :  { %3030 = vmatprep.subr.mxu1 %v3368_v4 }
 0xef6   :  { %v1543_v15 = vpop.xlane.xlu0 %1542 }
 0xef7   :  { %v1544_v16 = vmul.f32 0.03125, %v1543_v15 }
 0xef9   :  { %v1545_v17 = vadd.f32 1e-06, %v1544_v16 }
 0xefb   :  { %3316 = vrsqrt.f32 %v1545_v17 }
 0xf05   :  { %v3317_v18 = vpop.eup %3316 }
 0xf06   :  { %v1547_v20 = vmul.f32 %v3317_v18, %v3751_v58 }
 0xf08   :  { %v1552_v21 = vmul.f32 %v2750_v19, %v1547_v20 }
 0xf0a   :  { %2759 = vmatmul.mubr.msk.f32.vlgmr.msra.gmra.mrb[18].mxu1 %vm210_vm3, %v1552_v21 }
 0xf0b   :  { %3032 = vmatprep.mubr.msk.f32.mxu1 %vm3367_vm0, %v3368_v4 }
 0xfdd   :  { %v1631_v22 = vpop.f32.mrb[18].mxu1 }
 0xfde   :  { %v3800_v5 = vpop.f32.mrb[19].mxu1  ;;  %v1644_v23 = vmul.f32 %v1631_v22, %v3557_v1  ;;  %v1643_v24 = vmul.f32 %v1631_v22, %v3569_v9  ;;  %v1637_v28 = vmul.f32 %v1631_v22, %v3565_v7  ;;  %v1636_v30 = vmul.f32 %v1631_v22, %v3546_v57 }
 0xfe0   :  { %1646 = vrot.lane.b32.xlu0 %v1644_v23, %s3370_s30 }
0x1052   :  { %v1647_v25 = vpop.permute.xlu0 %1646 }
0x1053   :  { %v1649_v26 = vadd.f32 %v1647_v25, %v1643_v24 }
0x1055   :  { %1651 = vrot.lane.b32.xlu1 %v1649_v26, %s3371_s26 }
0x1059   :  { %1639 = vrot.lane.b32.xlu1 %v1637_v28, %s3370_s30 }
0x10c7   :  { %v1652_v29 = vpop.permute.xlu1 %1651 }
0x10c8   :  { %3031 = vmatpush3.xpose.msk.msra.mxu1 %vm136_vm2, %v1652_v29 }
0x10c9   :  { %3035 = vmatprep.subr.mxu1 %v3368_v4 }
0x10cb   :  { %v1640_v1 = vpop.permute.xlu1 %1639 }
0x10cc   :  { %v1642_v31 = vadd.f32 %v1640_v1, %v1636_v30 }
0x10ce   :  { %3033 = vmatmul.mubr.msk.f32.vlgmr.msra.gmra.mrb[20].mxu1 %vm136_vm2, %v1642_v31 }
0x10cf   :  { %3036 = vmatpush3.msra.mxu1 %v3800_v5  ;;  %3037 = vmatprep.mubr.msk.f32.mxu1 %vm3367_vm0, %v3368_v4 }
0x10d0   :  { %3040 = vmatprep.subr.mxu1 %v3368_v4 }
0x11a1   :  { %v1724_v7 = vpop.f32.mrb[20].mxu1 }
0x11a2   :  { %v1728_v9 = vmul.f32 0.35355338, %v1724_v7  ;;  %v3034_v32 = vpop.f32.mrb[21].mxu1 }
0x11a4   :  { %v1729_v33 = vsel %vm3600_vm4, %v1728_v9, -1e+30 }
0x11a5   :  { %v1730_v34 = vsel %vm136_vm2, %v1729_v33, -inf }
0x11a6   :  { %1731 = vmax.xlane.f32.xlu0 %v1730_v34 }
0x11bc   :  { %1816 = vrot.lane.b32.xlu0 %v1649_v26, %s3372_s8 }
0x1233   :  { %v1732_v57 = vpop.xlane.xlu0 %1731 }
0x1234   :  { %v1733_v35 = vsub.f32 %v1729_v33, %v1732_v57  ;;  %v3285_v33 = vpack.i.bf16 %v3782_v10, %v3777_v8 }
0x1236   :  { %v1734_v36 = vmul.f32 1.442695, %v1733_v35 }
0x1237   :  { %v1817_v40 = vpop.permute.xlu0 %1816 }
0x1238   :  { %3318 = vpow2.f32 %v1734_v36 }
0x1242   :  { %v3319_v37 = vpop.eup %3318 }
0x1243   :  { %v1736_v38 = vsel %vm136_vm2, %v3319_v37, 0.0 }
0x1244   :  { %1737 = vadd.xlane.f32.xlu1 %v1736_v38 }
0x1255   :  { %1814 = vrot.lane.b32.xlu1 %v1642_v31, %s3374_s10 }
0x1259   :  { %1984 = vrot.lane.b32.xlu1 %v1649_v26, %s3375_s11 }
0x12d1   :  { %v1738_v39 = vpop.xlane.xlu1 %1737 }
0x12d2   :  { %3320 = vrcp.f32 %v1738_v39 }
0x12d5   :  { %v1815_v50 = vpop.permute.xlu1 %1814 }
0x12d9   :  { %v1985_v61 = vpop.permute.xlu1 %1984 }
0x12dc   :  { %v3321_v44 = vpop.eup %3320 }
0x12dd   :  { %v1740_v45 = vmul.f32 %v3321_v44, %v3319_v37 }
0x12df   :  { %3038 = vmatmul.mubr.msk.f32.vlgmr.msra.gmra.mrb[22].mxu1 %vm136_vm2, %v1740_v45 }
0x12e0   :  { %3041 = vmatpush3.xpose.msk.msra.mxu1 %vm136_vm2, %v1817_v40  ;;  %3042 = vmatprep.mubr.msk.f32.mxu1 %vm3367_vm0, %v3368_v4 }
0x12e1   :  { %3045 = vmatprep.subr.mxu1 %v3368_v4 }
0x12e3   :  { %3043 = vmatmul.mubr.msk.f32.vlgmr.msra.gmra.mrb[24].mxu1 %vm136_vm2, %v1815_v50 }
0x12e4   :  { %3047 = vmatprep.mubr.msk.f32.mxu1 %vm3367_vm0, %v3368_v4 }
0x13b2   :  { %v3831_v51 = vpop.f32.mrb[22].mxu1 }
0x13b3   :  { %v3039_v42 = vpop.f32.mrb[23].mxu1 }
0x13b6   :  { %v1888_v43 = vpop.f32.mrb[24].mxu1 }
0x13b7   :  { %v1892_v46 = vmul.f32 0.35355338, %v1888_v43  ;;  %v3044_v47 = vpop.f32.mrb[25].mxu1 }
0x13b9   :  { %v1893_v48 = vsel %vm3600_vm4, %v1892_v46, -1e+30 }
0x13ba   :  { %v1894_v49 = vsel %vm136_vm2, %v1893_v48, -inf }
0x13bb   :  { %1895 = vmax.xlane.f32.xlu0 %v1894_v49 }
0x13d1   :  { %1906 = vrot.lane.b32.xlu0 %v3800_v5, %s3374_s10 }
0x13d5   :  { %1982 = vrot.lane.b32.xlu0 %v1642_v31, %s3373_s9 }
0x13d9   :  { %2149 = vrot.lane.b32.xlu0 %v1642_v31, %s3377_s1 }
0x1448   :  { %v1896_v52 = vpop.xlane.xlu0 %1895 }
0x1449   :  { %v1897_v53 = vsub.f32 %v1893_v48, %v1896_v52 }
0x144b   :  { %v1898_v54 = vmul.f32 1.442695, %v1897_v53 }
0x144c   :  { %v1907_v55 = vpop.permute.xlu0 %1906 }
0x144d   :  { %3322 = vpow2.f32 %v1898_v54  ;;  %3046 = vmatpush3.msra.mxu1 %v1907_v55 }
0x144e   :  { %3050 = vmatprep.subr.mxu1 %v3368_v4 }
0x1450   :  { %v1983_v0 = vpop.permute.xlu0 %1982 }
0x1454   :  { %v2150_v6 = vpop.permute.xlu0 %2149 }
0x1457   :  { %v3323_v59 = vpop.eup %3322 }
0x1458   :  { %v1900_v60 = vsel %vm136_vm2, %v3323_v59, 0.0 }
0x1459   :  { %1901 = vadd.xlane.f32.xlu1 %v1900_v60 }
0x146a   :  { %2151 = vrot.lane.b32.xlu1 %v1649_v26, %s3376_s12 }
0x14e6   :  { %v1902_v56 = vpop.xlane.xlu1 %1901 }
0x14e7   :  { %3324 = vrcp.f32 %v1902_v56 }
0x14ea   :  { %v2152_v3 = vpop.permute.xlu1 %2151 }
0x14eb   :  { %3061 = vmatpush3.xpose.msk.msra.mxu0 %vm136_vm2, %v2152_v3  ;;  %v2777_v3 = vld [vmem:[%s4041_s5 + $0x58] sm:$0xff] }
0x14ec   :  { %3204 = vmatprep.subr.bf16.mxu0 %v3366_v2 }
0x14ee   :  { %3063 = vmatmul.mubr.msk.f32.vlgmr.msra.gmra.mrb[16].mxu0 %vm136_vm2, %v2150_v6 }
0x14ef   :  { %3078 = vmatprep.mubr.msk.f32.mxu0 %vm3367_vm0, %v3368_v4 }
0x14f1   :  { %v3325_v11 = vpop.eup %3324 }
0x14f2   :  { %v1904_v12 = vmul.f32 %v3325_v11, %v3323_v59  ;;  %v2776_v11 = vld [vmem:[%s4041_s5 + $0x50] sm:$0xff] }
0x14f4   :  { %3048 = vmatmul.mubr.msk.f32.vlgmr.msra.gmra.mrb[26].mxu1 %vm136_vm2, %v1904_v12 }
0x14f5   :  { %3051 = vmatpush3.xpose.msk.msra.mxu1 %vm136_vm2, %v1985_v61  ;;  %3052 = vmatprep.mubr.msk.f32.mxu1 %vm3367_vm0, %v3368_v4 }
0x14f6   :  { %3055 = vmatprep.subr.mxu1 %v3368_v4 }
0x14f8   :  { %3053 = vmatmul.mubr.msk.f32.vlgmr.msra.gmra.mrb[28].mxu1 %vm136_vm2, %v1983_v0  ;;  %v2775_v0 = vld [vmem:[%s4041_s5 + $0x48] sm:$0xff] }
0x14f9   :  { %3057 = vmatprep.mubr.msk.f32.mxu1 %vm3367_vm0, %v3368_v4  ;;  %v3210_v6 = vpack.c.bf16 %v2777_v3, %v2775_v0  ;;  %v54_v0 = vld [vmem:[%s4039_s3 + $0x70] sm:$0xff]  ;;  %v55_v3 = vld [vmem:[%s4039_s3 + $0x78] sm:$0xff] }
0x15c1   :  { %v2223_v13 = vpop.f32.mrb[16].mxu0 }
0x15c2   :  { %v2227_v14 = vmul.f32 0.35355338, %v2223_v13  ;;  %v3064_v15 = vpop.f32.mrb[17].mxu0  ;;  %v2779_v13 = vld [vmem:[%s4041_s5 + $0x68] sm:$0xff] }
0x15c4   :  { %v2228_v16 = vsel %vm3600_vm4, %v2227_v14, -1e+30  ;;  %v2781_v14 = vld [vmem:[%s4041_s5 + $0x78] sm:$0xff] }
0x15c5   :  { %v2229_v17 = vsel %vm136_vm2, %v2228_v16, -inf  ;;  %v3214_v15 = vpack.c.bf16 %v2781_v14, %v2779_v13 }
0x15c6   :  { %2230 = vmax.xlane.f32.xlu0 %v2229_v17  ;;  %v2780_v17 = vld [vmem:[%s4041_s5 + $0x70] sm:$0xff] }
0x15c7   :  { %v1978_v18 = vpop.f32.mrb[26].mxu1 }
0x15c8   :  { %v3049_v19 = vpop.f32.mrb[27].mxu1 }
0x15cb   :  { %v2056_v20 = vpop.f32.mrb[28].mxu1 }
0x15cc   :  { %v2060_v21 = vmul.f32 0.35355338, %v2056_v20  ;;  %v3054_v22 = vpop.f32.mrb[29].mxu1 }
0x15ce   :  { %v2061_v23 = vsel %vm3600_vm4, %v2060_v21, -1e+30 }
0x15cf   :  { %v2062_v24 = vsel %vm136_vm2, %v2061_v23, -inf }
0x15d0   :  { %2063 = vmax.xlane.f32.xlu1 %v2062_v24 }
0x1653   :  { %v2231_v25 = vpop.xlane.xlu0 %2230 }
0x1654   :  { %v2232_v26 = vsub.f32 %v2228_v16, %v2231_v25  ;;  %v2778_v16 = vld [vmem:[%s4041_s5 + $0x60] sm:$0xff] }
0x1656   :  { %v2233_v28 = vmul.f32 1.442695, %v2232_v26  ;;  %v2784_v26 = vld [vmem:[%s4042_s6 + $0x80] sm:$0xff] }
0x1658   :  { %3326 = vpow2.f32 %v2233_v28  ;;  %v2785_v28 = vld [vmem:[%s4042_s6 + $0x88] sm:$0xff] }
0x165d   :  { %v2064_v29 = vpop.xlane.xlu1 %2063 }
0x165e   :  { %v2065_v30 = vsub.f32 %v2061_v23, %v2064_v29  ;;  %v2773_v23 = vld [vmem:[%s4038_s2 + $0x18] ss:$0 sm:$0xff]  ;;  %v3219_v29 = vpack.c.bf16 %v2785_v28, %v2784_v26 }
0x1660   :  { %v2066_v1 = vmul.f32 1.442695, %v2065_v30  ;;  %v2786_v30 = vld [vmem:[%s4042_s6 + $0x90] sm:$0xff] }
0x1662   :  { %v3327_v31 = vpop.eup %3326  ;;  %3328 = vpow2.f32 %v2066_v1 }
0x1663   :  { %v2235_v7 = vsel %vm136_vm2, %v3327_v31, 0.0 }
0x1664   :  { %2236 = vadd.xlane.f32.xlu1 %v2235_v7  ;;  %v2789_v7 = vld [vmem:[%s4042_s6 + $0xa8] sm:$0xff] }
0x166c   :  { %v3329_v9 = vpop.eup %3328 }
0x166d   :  { %v2068_v32 = vsel %vm136_vm2, %v3329_v9, 0.0 }
0x166e   :  { %2069 = vadd.xlane.f32.xlu0 %v2068_v32  ;;  %v2790_v32 = vld [vmem:[%s4042_s6 + $0xb0] sm:$0xff] }
0x1675   :  { %2240 = vrot.lane.b32.xlu1 %v3800_v5, %s3377_s1 }
0x1679   :  { %3281 = vrot.lane.b32.xlu1 %v3280_v27, %s3370_s30  ;;  %v2791_v27 = vld [vmem:[%s4042_s6 + $0xb8] sm:$0xff] }
0x167d   :  { %2317 = vrot.lane.b32.xlu1 %v1978_v18, %s3378_s13  ;;  %v3216_v18 = vpack.c.bf16 %v2780_v17, %v2778_v16  ;;  %v2800_v17 = vld [vmem:[%s4038_s2 + $0x14] ss:$0 sm:$0xff] }
0x1684   :  { %2073 = vrot.lane.b32.xlu0 %v3800_v5, %s3373_s9 }
0x1688   :  { %3286 = vrot.lane.b32.xlu0 %v3285_v33, %s3370_s30  ;;  %v3228_v33 = vpack.c.bf16 %v2791_v27, %v2790_v32 }
0x16f1   :  { %v2237_v34 = vpop.xlane.xlu1 %2236 }
0x16f5   :  { %v2241_v57 = vpop.permute.xlu1 %2240 }
0x16f9   :  { %v3282_v35 = vpop.permute.xlu1 %3281 }
0x16fa   :  { %v3284_v36 = vunpack.i.h.bf16 %v3282_v35  ;;  %v3283_v37 = vunpack.i.l.bf16 %v3282_v35 }
0x16fb   :  { %v2070_v38 = vpop.xlane.xlu0 %2069 }
0x16fc   :  { %v3205_v39 = vpack.c.bf16 %v3284_v36, %v3283_v37  ;;  %3330 = vrcp.f32 %v2070_v38  ;;  %v2794_v36 = vld [vmem:[%s4042_s6 + $0xd0] sm:$0xff]  ;;  %v2795_v37 = vld [vmem:[%s4042_s6 + $0xd8] sm:$0xff] }
0x16fd   :  { %3332 = vrcp.f32 %v2237_v34  ;;  %v2318_v48 = vpop.permute.xlu1 %2317  ;;  %v2792_v34 = vld [vmem:[%s4042_s6 + $0xc0] sm:$0xff]  ;;  %v3234_v38 = vpack.c.bf16 %v2795_v37, %v2794_v36 }
0x16fe   :  { %3206 = vmatpush3.bf16.msra.mxu0 %v3205_v39  ;;  %v2328_v52 = vsel %vm136_vm2, %v3831_v51, %v2318_v48  ;;  %v2796_v39 = vld [vmem:[%s4042_s6 + $0xe0] sm:$0xff] }
0x16ff   :  { %v2074_v62 = vpop.permute.xlu0 %2073  ;;  %3207 = vmatprep.subr.bf16.mxu0 %v3366_v2 }
0x1700   :  { %3056 = vmatpush3.msra.mxu1 %v2074_v62  ;;  %v2797_v62 = vld [vmem:[%s4042_s6 + $0xe8] sm:$0xff] }
0x1701   :  { %3065 = vmatprep.subr.mxu1 %v3368_v4 }
0x1703   :  { %v3287_v44 = vpop.permute.xlu0 %3286 }
0x1704   :  { %v3289_v45 = vunpack.i.h.bf16 %v3287_v44  ;;  %v3288_v40 = vunpack.i.l.bf16 %v3287_v44 }
0x1706   :  { %v3331_v63 = vpop.eup %3330  ;;  %v3208_v50 = vpack.c.bf16 %v3289_v45, %v3288_v40 }
0x1707   :  { %v2072_v8 = vmul.f32 %v3331_v63, %v3329_v9  ;;  %v3333_v10 = vpop.eup %3332  ;;  %v3237_v63 = vpack.c.bf16 %v2797_v62, %v2796_v39 }
0x1708   :  { %v2239_v5 = vmul.f32 %v3333_v10, %v3327_v31  ;;  %3209 = vmatpush3.bf16.msra.mxu0 %v3208_v50  ;;  %v2788_v31 = vld [vmem:[%s4042_s6 + $0xa0] sm:$0xff]  ;;  %v2799_v10 = vld [vmem:[%s4042_s6 + $0xf8] sm:$0xff] }
0x1709   :  { %3058 = vmatmul.mubr.msk.f32.vlgmr.msra.gmra.mrb[30].mxu1 %vm136_vm2, %v2072_v8  ;;  %3218 = vmatprep.subr.bf16.mxu0 %v3366_v2  ;;  %v3225_v9 = vpack.c.bf16 %v2789_v7, %v2788_v31  ;;  %v2798_v8 = vld [vmem:[%s4042_s6 + $0xf0] sm:$0xff] }
0x170a   :  { %3066 = vmatpush3.msra.mxu1 %v2241_v57  ;;  %3067 = vmatprep.mubr.msk.f32.mxu1 %vm3367_vm0, %v3368_v4  ;;  %v2793_v57 = vld [vmem:[%s4042_s6 + $0xc8] sm:$0xff] }
0x170b   :  { %3211 = vmatprep.subr.bf16.mxu1 %v3210_v6  ;;  %v3231_v35 = vpack.c.bf16 %v2793_v57, %v2792_v34  ;;  %v3249_v6 = vpack.c.bf16 %v55_v3, %v54_v0 }
0x170d   :  { %3068 = vmatmul.mubr.msk.f32.vlgmr.msra.gmra.mrb[32].mxu1 %vm136_vm2, %v2239_v5  ;;  %v3240_v5 = vpack.c.bf16 %v2799_v10, %v2798_v8 }
0x170e   :  { %2510 = vmatprep.mubr.f32.mxu1 %v3368_v4 }
0x17dc   :  { %v2145_v42 = vpop.f32.mrb[30].mxu1 }
0x17dd   :  { %2321 = vrot.lane.b32.xlu0 %v2145_v42, %s3379_s0  ;;  %v3059_v43 = vpop.f32.mrb[31].mxu1 }
0x17e0   :  { %v2312_v46 = vpop.f32.mrb[32].mxu1 }
0x17e1   :  { %2325 = vrot.lane.b32.xlu1 %v2312_v46, %s3380_s14  ;;  %v3069_v47 = vpop.f32.mrb[33].mxu1 }
0x184f   :  { %v2322_v49 = vpop.permute.xlu0 %2321 }
0x1850   :  { %v2329_v53 = vsel %vm58_vm1, %v2328_v52, %v2322_v49 }
0x1853   :  { %v2326_v54 = vpop.permute.xlu1 %2325 }
0x1854   :  { %v2330_v55 = vsel %vm1258_vm5, %v2329_v53, %v2326_v54 }
0x1855   :  { %3079 = vmatmul.mubr.msk.f32.vlgmr.msra.gmra.mrb[18].mxu0 %vm210_vm3, %v2330_v55  ;;  %v50_v55 = vld [vmem:[%s4039_s3 + $0x50] sm:$0xff] }
0x1856   :  { %3113 = vmatprep.mubr.msk.f32.mxu0 %vm3367_vm0, %v3368_v4  ;;  %3220 = vmatpush3.bf16.msra.mxu0 %v3219_v29 }
0x1857   :  { %3221 = vmatprep.subr.bf16.mxu0 %v3366_v2 }
0x1928   :  { %v2416_v59 = vpop.f32.mrb[18].mxu0 }
0x1929   :  { %v3893_v60 = vadd.f32 %v2416_v59, %v3751_v58  ;;  %v3080_v61 = vpop.f32.mrb[19].mxu0  ;;  %v2774_v58 = vld [vmem:[%s4041_s5 + $0x40] sm:$0xff]  ;;  %v51_v59 = vld [vmem:[%s4039_s3 + $0x58] sm:$0xff]  ;;  %s3342_s5 = scalar_lea.vmem %s2717_s23, 128 }
0x192a   :  { %v3212_v12 = vpack.c.bf16 %v2776_v11, %v2774_v58  ;;  %v52_v61 = vld [vmem:[%s4039_s3 + $0x60] sm:$0xff]  ;;  %v57_v11 = vld [vmem:[%s4039_s3 + $0x88] sm:$0xff]  ;;  %p3343_p0 = scmp.ne.s32.totalorder %s2717_s23, %s3342_s5  ;;  %p3348_p2 = scmp.lt.s32.totalorder %s3342_s5, %s3342_s5 }
0x192b   :  { %v2421_v56 = vmul.f32 %v3893_v60, %v3893_v60  ;;  %v56_v58 = vld [vmem:[%s4039_s3 + $0x80] sm:$0xff] }
0x192c   :  { %3213 = vmatpush1.bf16.msra.mxu1 %v3212_v12  ;;  %v3252_v12 = vpack.c.bf16 %v57_v11, %v56_v58  ;;  %p3349_p3 = por %p3348_p2, %p3347_p1 }
0x192d   :  { %v2422_v51 = vsel %vm210_vm3, %v2421_v56, 0.0  ;;  %3215 = vmatprep.subr.bf16.mxu1 %v3214_v15  ;;  %v3243_v56 = vpack.c.bf16 %v51_v59, %v50_v55 }
0x192e   :  { %2423 = vadd.xlane.f32.xlu0 %v2422_v51  ;;  %p3350_p4 = pnand %p3349_p3, %p3343_p0 }
0x1930   :  { %3217 = vmatpush1.bf16.msra.mxu1 %v3216_v18 }
0x1931   :  { %3242 = vmatprep.subr.bf16.mxu1 %v3366_v2 }
0x19bb   :  { %v2424_v19 = vpop.xlane.xlu0 %2423 }
0x19bc   :  { %v2425_v20 = vmul.f32 0.03125, %v2424_v19 }
0x19be   :  { %v2426_v21 = vadd.f32 1e-06, %v2425_v20 }
0x19c0   :  { %3334 = vrsqrt.f32 %v2426_v21 }
0x19ca   :  { %v3335_v22 = vpop.eup %3334 }
0x19cb   :  { %v2428_v24 = vmul.f32 %v3335_v22, %v3893_v60 }
0x19cd   :  { %v2433_v25 = vmul.f32 %v2773_v23, %v2428_v24 }
0x19cf   :  { %2782 = vmatmul.mubr.msk.f32.vlgmr.msra.gmra.mrb[34].mxu1 %vm210_vm3, %v2433_v25 }
0x19d0   :  { %3132 = vmatprep.mubr.msk.f32.mxu1 %vm3367_vm0, %v3368_v4  ;;  %v2787_v4 = vld [vmem:[%s4042_s6 + $0x98] sm:$0xff]  ;;  %3244 = vmatpush3.bf16.msra.mxu1 %v3243_v56 }
0x19d1   :  { %v3222_v1 = vpack.c.bf16 %v2787_v4, %v2786_v30  ;;  %3245 = vmatprep.subr.bf16.mxu1 %v3366_v2 }
0x19d3   :  { %3223 = vmatpush3.bf16.msra.mxu0 %v3222_v1 }
0x19d4   :  { %3224 = vmatprep.subr.bf16.mxu0 %v3366_v2 }
0x19d7   :  { %3226 = vmatpush3.bf16.msra.mxu0 %v3225_v9 }
0x19d8   :  { %3227 = vmatprep.subr.bf16.mxu0 %v3366_v2 }
0x19db   :  { %3229 = vmatpush3.bf16.msra.mxu0 %v3228_v33 }
0x19dc   :  { %3230 = vmatprep.subr.bf16.mxu0 %v3366_v2 }
0x19df   :  { %3232 = vmatpush3.bf16.msra.mxu0 %v3231_v35 }
0x19e0   :  { %3233 = vmatprep.subr.bf16.mxu0 %v3366_v2 }
0x19e3   :  { %3235 = vmatpush3.bf16.msra.mxu0 %v3234_v38 }
0x19e4   :  { %3236 = vmatprep.subr.bf16.mxu0 %v3366_v2 }
0x19e7   :  { %3238 = vmatpush3.bf16.msra.mxu0 %v3237_v63 }
0x19e8   :  { %3239 = vmatprep.subr.bf16.mxu0 %v3366_v2 }
0x19eb   :  { %3241 = vmatpush3.bf16.msra.mxu0 %v3240_v5 }
0x1aa2   :  { %v2512_v44 = vpop.f32.mrb[34].mxu1 }
0x1aa3   :  { %v2783_v45 = vmul.f32 -1.442695, %v2512_v44  ;;  %v2514_v40 = vpop.f32.mrb[35].mxu1 }
0x1aa5   :  { %3336 = vpow2.f32 %v2783_v45 }
0x1aaf   :  { %v3337_v50 = vpop.eup %3336 }
0x1ab0   :  { %v2520_v42 = vadd.f32 1.0, %v3337_v50 }
0x1ab2   :  { %3338 = vrcp.f32 %v2520_v42 }
0x1abc   :  { %v3339_v43 = vpop.eup %3338 }
0x1abd   :  { %v2523_v46 = vmul.f32 %v3339_v43, %v2512_v44 }
0x1abf   :  { %v2524_v47 = vmul.f32 %v2523_v46, %v2514_v40 }
0x1ac1   :  { %3114 = vmatmul.mubr.f32.vlgmr.msra.gmra.mrb[20].mxu0 %v2524_v47 }
0x1b94   :  { %v2608_v48 = vpop.f32.mrb[20].mxu0 }
0x1b95   :  { %v2612_v49 = vadd.f32 %v2608_v48, %v3893_v60  ;;  %v3115_v52 = vpop.f32.mrb[21].mxu0  ;;  %v53_v60 = vld [vmem:[%s4039_s3 + $0x68] sm:$0xff] }
0x1b96   :  { %v3246_v51 = vpack.c.bf16 %v53_v60, %v52_v61 }
0x1b97   :  { %v2613_v53 = vmul.f32 %v2612_v49, %v2612_v49 }
0x1b98   :  { %3247 = vmatpush3.bf16.msra.mxu1 %v3246_v51 }
0x1b99   :  { %v2614_v54 = vsel %vm210_vm3, %v2613_v53, 0.0  ;;  %3248 = vmatprep.subr.bf16.mxu1 %v3366_v2 }
0x1b9a   :  { %2615 = vadd.xlane.f32.xlu1 %v2614_v54 }
0x1b9c   :  { %3250 = vmatpush3.bf16.msra.mxu1 %v3249_v6 }
0x1b9d   :  { %3251 = vmatprep.subr.bf16.mxu1 %v3366_v2  ;;  %v2801_v2 = vld [vmem:[%s4038_s2 + $0x13] ss:$0 sm:$0xff] }
0x1ba0   :  { %3253 = vmatpush3.bf16.msra.mxu1 %v3252_v12 }
0x1c27   :  { %v2616_v13 = vpop.xlane.xlu1 %2615 }
0x1c28   :  { %v2617_v14 = vmul.f32 0.03125, %v2616_v13 }
0x1c2a   :  { %v2618_v15 = vadd.f32 1e-06, %v2617_v14 }
0x1c2c   :  { %3340 = vrsqrt.f32 %v2618_v15 }
0x1c36   :  { %v3341_v16 = vpop.eup %3340 }
0x1c37   :  { %v2620_v18 = vmul.f32 %v3341_v16, %v2612_v49 }
0x1c39   :  { %v2625_v19 = vmul.f32 %v2800_v17, %v2620_v18 }
0x1c3b   :  { %2627 = vrot.lane.b32.xlu0 %v2625_v19, %s3369_s27 }
0x1cad   :  { %v2628_v20 = vpop.permute.xlu0 %2627 }
0x1cae   :  { %v2630_v21 = vsel %vm210_vm3, %v3496_v41, %v2628_v20 }
0x1caf   :  { %3133 = vmatmul.mubr.msk.f32.vlgmr.msra.gmra.mrb[36].mxu1 %vm2635_vm6, %v2630_v21 }
0x1d82   :  { %v2705_v22 = vpop.f32.mrb[36].mxu1 }
0x1d83   :  { %v2706_v23 = vadd.f32 %v2801_v2, %v2705_v22  ;;  %v3134_v24 = vpop.f32.mrb[37].mxu1 }
0x1d85   :  { %2709 = vst.msk [vmem:[#allocation2] sm:$0xff] %vm210_vm3, %v2706_v23 }
0x1d86   :  { %3353 = shalt.err (!%p3350_p4)
}
0x1d87   :  { %s3354_s25 = scalar_lea.hbm %s4043_s7, 128 }
0x1d88   :  { %p3355_p5 = scmp.ne.s32.totalorder %s4043_s7, %s3354_s25  ;;  %p3358_p6 = scmp.lt.u32.totalorder %s3354_s25, %s4043_s7 }
0x1d8a   :  { %p3360_p7 = pnand %p3358_p6, %p3355_p5 }
0x1d8c   :  { %3363 = shalt.err (!%p3360_p7)
}
0x1d8d   :  { %2719 = dma.vmem_to_hbm [thread:$0]  %s2717_s23, 128, %s4043_s7, [#allocation3]  }
0x1d8e   :  { %3364 = dma.done.wait [#allocation3], 128  }
0x1d8f   :  { %3365 = vsyncadd [#allocation3], 4294967168 }
0x1d90   :  { %2723 = vsyncpa [#allocation3], 1 }

</bundles_post_ra>
